<compile_context>
chip_gen: v5e
topology: v5e:2x2
jax: 0.10.0
libtpu: 0.0.40
codegen_flags: <defaults>
</compile_context>

<pallas_src>
import functools
import math

import jax
import jax.numpy as jnp
from jax import lax
from jax.experimental import pallas as pl
from jax.experimental.pallas import tpu as pltpu


# ----------------------------- in-kernel helpers -----------------------------

def _layernorm(x, g, b, eps):
    """Annotated-Transformer LayerNorm: g*(x-mean)/(std+eps)+b, UNBIASED std."""
    d = x.shape[-1]
    mean = jnp.mean(x, axis=-1, keepdims=True)
    diff = x - mean
    var = jnp.sum(diff * diff, axis=-1, keepdims=True) * (1.0 / (d - 1))
    std = jnp.sqrt(var)
    return g * diff / (std + eps) + b          # exact division (review note)


# --------------------------------- the kernel ---------------------------------

def _lid_kernel(x_ref, bias_ref,
                wt_ref, bt_ref, g1_ref, b1_ref, pe_ref, g2_ref, b2_ref, tile_ref,
                wq_ref, bq_ref, wk_ref, bk_ref, wv_ref, bv_ref,
                wo_ref, bo_ref, ga_ref, ba_ref,
                w1_ref, b1f_ref, w2_ref, b2f_ref, gf_ref, bf_ref,
                mean_ref, std_ref,
                *, n_blocks, n_heads, d_k, eps):
    f32 = jnp.float32
    bf16 = jnp.bfloat16

    # ---- front-end: transform + LN1 + pos-enc + LN2 + head tiling ----------
    x_in = x_ref[0]                                              # (T, in_dim)
    y = jnp.dot(x_in, wt_ref[...], preferred_element_type=f32) + bt_ref[...]
    y = _layernorm(y, g1_ref[...], b1_ref[...], eps)
    y = y + pe_ref[...]
    y = _layernorm(y, g2_ref[...], b2_ref[...], eps)
    # Repeat features n_heads times along the lanes via a constant 0/1 tile
    # matrix -> lane-dense (T, d_model) in one MXU push (kept f32: tiny, and
    # preserves the residual-stream input precision).
    x0 = jnp.dot(y, tile_ref[...], preferred_element_type=f32)   # (T, d_model)

    T, d_model = x0.shape
    bias = bias_ref[...]                       # (1, 1, T) additive key mask
    scale = 1.0 / math.sqrt(d_k)

    # ---- encoder stack: fori_loop over blocks, weights indexed dynamically --
    def block_body(blk, x):
        xb = x.astype(bf16)
        xh = jnp.broadcast_to(xb[None], (n_heads, T, d_model))   # head batch

        # Head-batched Q/K/V projections (leading batch dim; weights stored
        # as (H, d, d_model) so the contraction is over the last dims).
        q = jnp.einsum('htd,hkd->htk', xh, wq_ref[blk],
                       preferred_element_type=f32) + bq_ref[blk]   # (H,T,dk)
        k = jnp.einsum('htd,hkd->htk', xh, wk_ref[blk],
                       preferred_element_type=f32) + bk_ref[blk]   # (H,T,dk)
        v = jnp.einsum('htd,hkd->htk', xh, wv_ref[blk],
                       preferred_element_type=f32) + bv_ref[blk]   # (H,T,dv)

        # Scores + softmax: f32 accumulation, f32 mask add & max-subtraction.
        s = jnp.einsum('hqd,hkd->hqk', q.astype(bf16), k.astype(bf16),
                       preferred_element_type=f32) * scale          # (H,T,T)
        s = s + bias
        m = jnp.max(s, axis=-1, keepdims=True)
        p = jnp.exp(s - m)
        p = p * pl.reciprocal(jnp.sum(p, axis=-1, keepdims=True), approx=True)

        ctx = jnp.einsum('hqk,hkd->hqd', p.astype(bf16), v.astype(bf16),
                         preferred_element_type=f32)                # (H,T,dv)

        # Output projection folded per head then summed over heads
        # (== concat-heads @ Wo), + residual + LayerNorm.
        attn = jnp.einsum('htd,hdm->htm', ctx.astype(bf16), wo_ref[blk],
                          preferred_element_type=f32)               # (H,T,dm)
        attn = jnp.sum(attn, axis=0) + bo_ref[blk]                  # (T,dm)
        x = _layernorm(attn + x, ga_ref[blk], ba_ref[blk], eps)

        # Position-wise FFN (d_ff zero-padded to a full 128-lane tile).
        ff = jnp.maximum(
            jnp.dot(x.astype(bf16), w1_ref[blk],
                    preferred_element_type=f32) + b1f_ref[blk], 0.0)
        ff = jnp.dot(ff.astype(bf16), w2_ref[blk],
                     preferred_element_type=f32) + b2f_ref[blk]
        return _layernorm(ff + x, gf_ref[blk], bf_ref[blk], eps)

    xN = lax.fori_loop(0, n_blocks, block_body, x0)                 # (T,dm)

    # ---- stats-pooling epilogue: mean / unbiased std over time --------------
    mean = jnp.mean(xN, axis=0, keepdims=True)                      # (1,dm)
    diff = xN - mean
    var = jnp.sum(diff * diff, axis=0, keepdims=True) * (1.0 / (T - 1))
    mean_ref[0] = mean
    std_ref[0] = jnp.sqrt(var)


# ------------------------------ kernel wrapper --------------------------------

def transformer_e2e_lid_forward(params, x, seq_len, atten_mask, *, n_heads,
                                d_k, d_v):
    # TODO(synk): seq_len only shapes atten_mask (built by the caller); the
    # reference PositionalEncoding ignores per-sample lengths in its add.
    del seq_len
    B, T, input_dim = x.shape
    feat = params["transform"]["w"].shape[1]
    d_model = feat * n_heads
    blk = params["blocks"]
    n_blocks = blk["wq"].shape[0]
    dffp = blk["w_ff1"].shape[-1]

    # Key-only additive attention bias (0 = attend, -1e9 = masked), (B, 1, T).
    key_bias = jnp.where(atten_mask[:, 0, :] > 0.5, -1e9, 0.0)
    key_bias = key_bias.astype(jnp.float32)[:, None, :]

    pe = params["pe"][:T]                                           # (T, feat)
    tile_mat = jnp.tile(jnp.eye(feat, dtype=jnp.float32), (1, n_heads))

    weights = [
        params["transform"]["w"], params["transform"]["b"],
        params["ln1"]["g"], params["ln1"]["b"], pe,
        params["ln2"]["g"], params["ln2"]["b"], tile_mat,
        blk["wq"], blk["bq"], blk["wk"], blk["bk"], blk["wv"], blk["bv"],
        blk["wo"], blk["bo"], blk["ln_attn_g"], blk["ln_attn_b"],
        blk["w_ff1"], blk["b_ff1"], blk["w_ff2"], blk["b_ff2"],
        blk["ln_ff_g"], blk["ln_ff_b"],
    ]

    def full_spec(a):
        nd = a.ndim
        return pl.BlockSpec(a.shape, lambda b, _nd=nd: (0,) * _nd)

    in_specs = ([pl.BlockSpec((1, T, input_dim), lambda b: (b, 0, 0)),
                 pl.BlockSpec((1, 1, T), lambda b: (b, 0, 0))]
                + [full_spec(w) for w in weights])

    # Advisory cost estimate for the XLA scheduler.
    hdk, hdv = n_heads * d_k, n_heads * d_v
    flops_block = (2 * T * d_model * (2 * hdk + hdv)       # Q/K/V projections
                   + 2 * n_heads * T * T * (d_k + d_v)     # scores + context
                   + 2 * T * hdv * d_model                 # output projection
                   + 4 * T * d_model * dffp)               # FFN
    flops = B * (2 * T * input_dim * feat + 2 * T * feat * d_model
                 + n_blocks * flops_block)
    transcendentals = B * n_blocks * n_heads * T * T
    bytes_accessed = int(sum(int(a.size) * a.dtype.itemsize
                             for a in (x, key_bias, *weights))
                         + 2 * B * d_model * 4)

    kernel = functools.partial(_lid_kernel, n_blocks=n_blocks,
                               n_heads=n_heads, d_k=d_k, eps=1e-6)
    mean_p, std_p = pl.pallas_call(
        kernel,
        out_shape=(jax.ShapeDtypeStruct((B, 1, d_model), jnp.float32),
                   jax.ShapeDtypeStruct((B, 1, d_model), jnp.float32)),
        grid=(B,),
        in_specs=in_specs,
        out_specs=(pl.BlockSpec((1, 1, d_model), lambda b: (b, 0, 0)),
                   pl.BlockSpec((1, 1, d_model), lambda b: (b, 0, 0))),
        compiler_params=pltpu.CompilerParams(
            dimension_semantics=("parallel",)),
        cost_estimate=pl.CostEstimate(flops=int(flops),
                                      transcendentals=int(transcendentals),
                                      bytes_accessed=bytes_accessed),
    )(x, key_bias, *weights)

    # Classifier in plain jnp (tiny; avoids another kernel launch).
    stats = jnp.concatenate([mean_p[:, 0, :], std_p[:, 0, :]], axis=-1)
    h = jnp.maximum(stats @ params["fc1"]["w"] + params["fc1"]["b"], 0.0)
    h = jnp.maximum(h @ params["fc2"]["w"] + params["fc2"]["b"], 0.0)
    return h @ params["fc3"]["w"] + params["fc3"]["b"]


# --------------------------------- parameters ---------------------------------

def sinusoidal_pe(max_len, dim):
    pos = jnp.arange(max_len, dtype=jnp.float32)[:, None]
    div = jnp.exp(jnp.arange(0, dim, 2, dtype=jnp.float32)
                  * (-jnp.log(10000.0) / dim))
    pe_sin = jnp.sin(pos * div)
    pe_cos = jnp.cos(pos * div)
    return jnp.stack([pe_sin, pe_cos], axis=-1).reshape(max_len, dim)


def init_params(key, input_dim, feat_dim, d_k, d_v, d_ff, n_heads, n_lang,
                max_seq_len, n_blocks=4):
    d_model = feat_dim * n_heads
    dff_pad = ((d_ff + 127) // 128) * 128          # lane-dense FFN intermediate
    keys = iter(jax.random.split(key, 8 + 8 * n_blocks))
    bf16 = jnp.bfloat16

    def w(k, din, dout):
        return jax.random.normal(k, (din, dout), jnp.float32) * 0.02

    params = {
        "transform": {"w": w(next(keys), input_dim, feat_dim),
                      "b": jnp.zeros((1, feat_dim), jnp.float32)},
        "ln1": {"g": jnp.ones((1, feat_dim), jnp.float32),
                "b": jnp.zeros((1, feat_dim), jnp.float32)},
        "ln2": {"g": jnp.ones((1, feat_dim), jnp.float32),
                "b": jnp.zeros((1, feat_dim), jnp.float32)},
        "pe": sinusoidal_pe(max_seq_len, feat_dim),
        "fc1": {"w": w(next(keys), 2 * d_model, d_model),
                "b": jnp.zeros((1, d_model), jnp.float32)},
        "fc2": {"w": w(next(keys), d_model, d_model),
                "b": jnp.zeros((1, d_model), jnp.float32)},
        "fc3": {"w": w(next(keys), d_model, n_lang),
                "b": jnp.zeros((1, n_lang), jnp.float32)},
    }

    # Per-block weights in kernel layout (stacked over blocks, bf16 matrices):
    #  * W_q/W_k/W_v of Linear(d_model, H*d) -> head-major (H, d, d_model)
    #    (i.e. head h's (d_model, d) slice, transposed).
    #  * W_o of Linear(H*d_v, d_model)       -> (H, d_v, d_model).
    #  * FFN weights zero-padded from d_ff to dff_pad (numerically identical).
    wq, wk, wv, wo, w1, w2 = [], [], [], [], [], []
    for _ in range(n_blocks):
        wq.append(w(next(keys), d_model, n_heads * d_k)
                  .reshape(d_model, n_heads, d_k).transpose(1, 2, 0))
        wk.append(w(next(keys), d_model, n_heads * d_k)
                  .reshape(d_model, n_heads, d_k).transpose(1, 2, 0))
        wv.append(w(next(keys), d_model, n_heads * d_v)
                  .reshape(d_model, n_heads, d_v).transpose(1, 2, 0))
        wo.append(w(next(keys), n_heads * d_v, d_model)
                  .reshape(n_heads, d_v, d_model))
        w1.append(jnp.pad(w(next(keys), d_model, d_ff),
                          ((0, 0), (0, dff_pad - d_ff))))
        w2.append(jnp.pad(w(next(keys), d_ff, d_model),
                          ((0, dff_pad - d_ff), (0, 0))))

    params["blocks"] = {
        "wq": jnp.stack(wq).astype(bf16),       # (nb, H, d_k, d_model)
        "bq": jnp.zeros((n_blocks, n_heads, 1, d_k), jnp.float32),
        "wk": jnp.stack(wk).astype(bf16),       # (nb, H, d_k, d_model)
        "bk": jnp.zeros((n_blocks, n_heads, 1, d_k), jnp.float32),
        "wv": jnp.stack(wv).astype(bf16),       # (nb, H, d_v, d_model)
        "bv": jnp.zeros((n_blocks, n_heads, 1, d_v), jnp.float32),
        "wo": jnp.stack(wo).astype(bf16),       # (nb, H, d_v, d_model)
        "bo": jnp.zeros((n_blocks, 1, d_model), jnp.float32),
        "ln_attn_g": jnp.ones((n_blocks, 1, d_model), jnp.float32),
        "ln_attn_b": jnp.zeros((n_blocks, 1, d_model), jnp.float32),
        "w_ff1": jnp.stack(w1).astype(bf16),    # (nb, d_model, dff_pad)
        "b_ff1": jnp.zeros((n_blocks, 1, dff_pad), jnp.float32),
        "w_ff2": jnp.stack(w2).astype(bf16),    # (nb, dff_pad, d_model)
        "b_ff2": jnp.zeros((n_blocks, 1, d_model), jnp.float32),
        "ln_ff_g": jnp.ones((n_blocks, 1, d_model), jnp.float32),
        "ln_ff_b": jnp.zeros((n_blocks, 1, d_model), jnp.float32),
    }
    return params


# ------------------------------------ main ------------------------------------

if __name__ == "__main__":
    key = jax.random.PRNGKey(0)
    k_param, k_x = jax.random.split(key)

    B, T = 2, 8
    input_dim, feat_dim = 20, 16
    d_k = d_v = 16
    d_ff = 64
    n_heads = 8
    n_lang = 3
    max_seq_len = 300

    params = init_params(k_param, input_dim, feat_dim, d_k, d_v, d_ff,
                         n_heads, n_lang, max_seq_len)

    x = jax.random.normal(k_x, (B, T, input_dim), jnp.float32)
    seq_len = jnp.array([8, 6], dtype=jnp.int32)
    # torch-style float mask: 1.0 where the key position is padding.
    key_valid = jnp.arange(T)[None, :] < seq_len[:, None]              # (B, T)
    atten_mask = jnp.tile((~key_valid).astype(jnp.float32)[:, None, :],
                          (1, T, 1))                                    # (B,T,T)

    fwd = jax.jit(functools.partial(transformer_e2e_lid_forward,
                                    n_heads=n_heads, d_k=d_k, d_v=d_v))
    logits = fwd(params, x, seq_len, atten_mask)
    logits = jax.block_until_ready(logits)

    assert logits.shape == (B, n_lang), logits.shape
    assert bool(jnp.all(jnp.isfinite(logits)))
    print("KERNEL_OK")
</pallas_src>

<mosaic_0001>
module attributes {stable_mosaic.version = 11 : i64} {
  func.func @_lid_kernel(%arg0: i32, %arg1: memref<1x8x20xf32, #tpu.memory_space<vmem>>, %arg2: memref<1x1x8xf32, #tpu.memory_space<vmem>>, %arg3: memref<20x16xf32, #tpu.memory_space<vmem>>, %arg4: memref<1x16xf32, #tpu.memory_space<vmem>>, %arg5: memref<1x16xf32, #tpu.memory_space<vmem>>, %arg6: memref<1x16xf32, #tpu.memory_space<vmem>>, %arg7: memref<8x16xf32, #tpu.memory_space<vmem>>, %arg8: memref<1x16xf32, #tpu.memory_space<vmem>>, %arg9: memref<1x16xf32, #tpu.memory_space<vmem>>, %arg10: memref<16x128xf32, #tpu.memory_space<vmem>>, %arg11: memref<4x8x16x128xbf16, #tpu.memory_space<vmem>>, %arg12: memref<4x8x1x16xf32, #tpu.memory_space<vmem>>, %arg13: memref<4x8x16x128xbf16, #tpu.memory_space<vmem>>, %arg14: memref<4x8x1x16xf32, #tpu.memory_space<vmem>>, %arg15: memref<4x8x16x128xbf16, #tpu.memory_space<vmem>>, %arg16: memref<4x8x1x16xf32, #tpu.memory_space<vmem>>, %arg17: memref<4x8x16x128xbf16, #tpu.memory_space<vmem>>, %arg18: memref<4x1x128xf32, #tpu.memory_space<vmem>>, %arg19: memref<4x1x128xf32, #tpu.memory_space<vmem>>, %arg20: memref<4x1x128xf32, #tpu.memory_space<vmem>>, %arg21: memref<4x128x128xbf16, #tpu.memory_space<vmem>>, %arg22: memref<4x1x128xf32, #tpu.memory_space<vmem>>, %arg23: memref<4x128x128xbf16, #tpu.memory_space<vmem>>, %arg24: memref<4x1x128xf32, #tpu.memory_space<vmem>>, %arg25: memref<4x1x128xf32, #tpu.memory_space<vmem>>, %arg26: memref<4x1x128xf32, #tpu.memory_space<vmem>>, %arg27: memref<1x1x128xf32, #tpu.memory_space<vmem>>, %arg28: memref<1x1x128xf32, #tpu.memory_space<vmem>>) attributes {dimension_semantics = [#tpu.dimension_semantics<parallel>], iteration_bounds = array<i64: 2>, scalar_prefetch = 0 : i64, scratch_operands = 0 : i64, tpu.core_type = #tpu.core_type<tc>, window_params = [{transform_indices = @transform_0, window_bounds = array<i64: 1, 8, 20>}, {transform_indices = @transform_1, window_bounds = array<i64: 1, 1, 8>}, {pipeline_mode = #tpu.pipeline_mode<synchronous>, transform_indices = @transform_2, window_bounds = array<i64: 20, 16>}, {pipeline_mode = #tpu.pipeline_mode<synchronous>, transform_indices = @transform_3, window_bounds = array<i64: 1, 16>}, {pipeline_mode = #tpu.pipeline_mode<synchronous>, transform_indices = @transform_4, window_bounds = array<i64: 1, 16>}, {pipeline_mode = #tpu.pipeline_mode<synchronous>, transform_indices = @transform_5, window_bounds = array<i64: 1, 16>}, {pipeline_mode = #tpu.pipeline_mode<synchronous>, transform_indices = @transform_6, window_bounds = array<i64: 8, 16>}, {pipeline_mode = #tpu.pipeline_mode<synchronous>, transform_indices = @transform_7, window_bounds = array<i64: 1, 16>}, {pipeline_mode = #tpu.pipeline_mode<synchronous>, transform_indices = @transform_8, window_bounds = array<i64: 1, 16>}, {pipeline_mode = #tpu.pipeline_mode<synchronous>, transform_indices = @transform_9, window_bounds = array<i64: 16, 128>}, {pipeline_mode = #tpu.pipeline_mode<synchronous>, transform_indices = @transform_10, window_bounds = array<i64: 4, 8, 16, 128>}, {pipeline_mode = #tpu.pipeline_mode<synchronous>, transform_indices = @transform_11, window_bounds = array<i64: 4, 8, 1, 16>}, {pipeline_mode = #tpu.pipeline_mode<synchronous>, transform_indices = @transform_12, window_bounds = array<i64: 4, 8, 16, 128>}, {pipeline_mode = #tpu.pipeline_mode<synchronous>, transform_indices = @transform_13, window_bounds = array<i64: 4, 8, 1, 16>}, {pipeline_mode = #tpu.pipeline_mode<synchronous>, transform_indices = @transform_14, window_bounds = array<i64: 4, 8, 16, 128>}, {pipeline_mode = #tpu.pipeline_mode<synchronous>, transform_indices = @transform_15, window_bounds = array<i64: 4, 8, 1, 16>}, {pipeline_mode = #tpu.pipeline_mode<synchronous>, transform_indices = @transform_16, window_bounds = array<i64: 4, 8, 16, 128>}, {pipeline_mode = #tpu.pipeline_mode<synchronous>, transform_indices = @transform_17, window_bounds = array<i64: 4, 1, 128>}, {pipeline_mode = #tpu.pipeline_mode<synchronous>, transform_indices = @transform_18, window_bounds = array<i64: 4, 1, 128>}, {pipeline_mode = #tpu.pipeline_mode<synchronous>, transform_indices = @transform_19, window_bounds = array<i64: 4, 1, 128>}, {pipeline_mode = #tpu.pipeline_mode<synchronous>, transform_indices = @transform_20, window_bounds = array<i64: 4, 128, 128>}, {pipeline_mode = #tpu.pipeline_mode<synchronous>, transform_indices = @transform_21, window_bounds = array<i64: 4, 1, 128>}, {pipeline_mode = #tpu.pipeline_mode<synchronous>, transform_indices = @transform_22, window_bounds = array<i64: 4, 128, 128>}, {pipeline_mode = #tpu.pipeline_mode<synchronous>, transform_indices = @transform_23, window_bounds = array<i64: 4, 1, 128>}, {pipeline_mode = #tpu.pipeline_mode<synchronous>, transform_indices = @transform_24, window_bounds = array<i64: 4, 1, 128>}, {pipeline_mode = #tpu.pipeline_mode<synchronous>, transform_indices = @transform_25, window_bounds = array<i64: 4, 1, 128>}, {transform_indices = @transform_26, window_bounds = array<i64: 1, 1, 128>}, {transform_indices = @transform_27, window_bounds = array<i64: 1, 1, 128>}]} {
    %c0 = arith.constant 0 : index
    %c0_0 = arith.constant 0 : index
    %c0_1 = arith.constant 0 : index
    %0 = vector.load %arg1[%c0, %c0_0, %c0_1] : memref<1x8x20xf32, #tpu.memory_space<vmem>>, vector<1x8x20xf32>
    %1 = vector.shape_cast %0 : vector<1x8x20xf32> to vector<8x20xf32>
    %c0_2 = arith.constant 0 : index
    %c0_3 = arith.constant 0 : index
    %2 = vector.load %arg3[%c0_2, %c0_3] : memref<20x16xf32, #tpu.memory_space<vmem>>, vector<20x16xf32>
    %cst = arith.constant dense<0.000000e+00> : vector<8x16xf32>
    %3 = tpu.matmul %1, %2, %cst {dimension_numbers = #tpu.dot_dimension_numbers<[1], [0], [0], [1], [0, 0, 1, 1], [], []>} : vector<8x20xf32>, vector<20x16xf32>, vector<8x16xf32> -> vector<8x16xf32>
    %c0_4 = arith.constant 0 : index
    %c0_5 = arith.constant 0 : index
    %4 = vector.load %arg4[%c0_4, %c0_5] : memref<1x16xf32, #tpu.memory_space<vmem>>, vector<1x16xf32>
    %5 = vector.broadcast %4 : vector<1x16xf32> to vector<8x16xf32>
    %6 = arith.addf %3, %5 : vector<8x16xf32>
    %c0_6 = arith.constant 0 : index
    %c0_7 = arith.constant 0 : index
    %7 = vector.load %arg5[%c0_6, %c0_7] : memref<1x16xf32, #tpu.memory_space<vmem>>, vector<1x16xf32>
    %c0_8 = arith.constant 0 : index
    %c0_9 = arith.constant 0 : index
    %8 = vector.load %arg6[%c0_8, %c0_9] : memref<1x16xf32, #tpu.memory_space<vmem>>, vector<1x16xf32>
    %cst_10 = arith.constant dense<0.000000e+00> : vector<8xf32>
    %9 = vector.multi_reduction <add>, %6, %cst_10 [1] : vector<8x16xf32> to vector<8xf32>
    %10 = vector.shape_cast %9 : vector<8xf32> to vector<8x1xf32>
    %cst_11 = arith.constant 1.600000e+01 : f32
    %11 = vector.broadcast %cst_11 : f32 to vector<8x1xf32>
    %12 = arith.divf %10, %11 : vector<8x1xf32>
    %13 = vector.broadcast %12 : vector<8x1xf32> to vector<8x16xf32>
    %14 = arith.subf %6, %13 : vector<8x16xf32>
    %15 = arith.mulf %14, %14 : vector<8x16xf32>
    %cst_12 = arith.constant dense<0.000000e+00> : vector<8xf32>
    %16 = vector.multi_reduction <add>, %15, %cst_12 [1] : vector<8x16xf32> to vector<8xf32>
    %17 = vector.shape_cast %16 : vector<8xf32> to vector<8x1xf32>
    %cst_13 = arith.constant 0.0666666701 : f32
    %18 = vector.broadcast %cst_13 : f32 to vector<8x1xf32>
    %19 = arith.mulf %17, %18 : vector<8x1xf32>
    %20 = math.sqrt %19 : vector<8x1xf32>
    %21 = vector.broadcast %7 : vector<1x16xf32> to vector<8x16xf32>
    %22 = arith.mulf %21, %14 : vector<8x16xf32>
    %cst_14 = arith.constant 9.99999997E-7 : f32
    %23 = vector.broadcast %cst_14 : f32 to vector<8x1xf32>
    %24 = arith.addf %20, %23 : vector<8x1xf32>
    %25 = vector.broadcast %24 : vector<8x1xf32> to vector<8x16xf32>
    %26 = arith.divf %22, %25 : vector<8x16xf32>
    %27 = vector.broadcast %8 : vector<1x16xf32> to vector<8x16xf32>
    %28 = arith.addf %26, %27 : vector<8x16xf32>
    %c0_15 = arith.constant 0 : index
    %c0_16 = arith.constant 0 : index
    %29 = vector.load %arg7[%c0_15, %c0_16] : memref<8x16xf32, #tpu.memory_space<vmem>>, vector<8x16xf32>
    %30 = arith.addf %28, %29 : vector<8x16xf32>
    %c0_17 = arith.constant 0 : index
    %c0_18 = arith.constant 0 : index
    %31 = vector.load %arg8[%c0_17, %c0_18] : memref<1x16xf32, #tpu.memory_space<vmem>>, vector<1x16xf32>
    %c0_19 = arith.constant 0 : index
    %c0_20 = arith.constant 0 : index
    %32 = vector.load %arg9[%c0_19, %c0_20] : memref<1x16xf32, #tpu.memory_space<vmem>>, vector<1x16xf32>
    %cst_21 = arith.constant dense<0.000000e+00> : vector<8xf32>
    %33 = vector.multi_reduction <add>, %30, %cst_21 [1] : vector<8x16xf32> to vector<8xf32>
    %34 = vector.shape_cast %33 : vector<8xf32> to vector<8x1xf32>
    %cst_22 = arith.constant 1.600000e+01 : f32
    %35 = vector.broadcast %cst_22 : f32 to vector<8x1xf32>
    %36 = arith.divf %34, %35 : vector<8x1xf32>
    %37 = vector.broadcast %36 : vector<8x1xf32> to vector<8x16xf32>
    %38 = arith.subf %30, %37 : vector<8x16xf32>
    %39 = arith.mulf %38, %38 : vector<8x16xf32>
    %cst_23 = arith.constant dense<0.000000e+00> : vector<8xf32>
    %40 = vector.multi_reduction <add>, %39, %cst_23 [1] : vector<8x16xf32> to vector<8xf32>
    %41 = vector.shape_cast %40 : vector<8xf32> to vector<8x1xf32>
    %cst_24 = arith.constant 0.0666666701 : f32
    %42 = vector.broadcast %cst_24 : f32 to vector<8x1xf32>
    %43 = arith.mulf %41, %42 : vector<8x1xf32>
    %44 = math.sqrt %43 : vector<8x1xf32>
    %45 = vector.broadcast %31 : vector<1x16xf32> to vector<8x16xf32>
    %46 = arith.mulf %45, %38 : vector<8x16xf32>
    %cst_25 = arith.constant 9.99999997E-7 : f32
    %47 = vector.broadcast %cst_25 : f32 to vector<8x1xf32>
    %48 = arith.addf %44, %47 : vector<8x1xf32>
    %49 = vector.broadcast %48 : vector<8x1xf32> to vector<8x16xf32>
    %50 = arith.divf %46, %49 : vector<8x16xf32>
    %51 = vector.broadcast %32 : vector<1x16xf32> to vector<8x16xf32>
    %52 = arith.addf %50, %51 : vector<8x16xf32>
    %c0_26 = arith.constant 0 : index
    %c0_27 = arith.constant 0 : index
    %53 = vector.load %arg10[%c0_26, %c0_27] : memref<16x128xf32, #tpu.memory_space<vmem>>, vector<16x128xf32>
    %cst_28 = arith.constant dense<0.000000e+00> : vector<8x128xf32>
    %54 = tpu.matmul %52, %53, %cst_28 {dimension_numbers = #tpu.dot_dimension_numbers<[1], [0], [0], [1], [0, 0, 1, 1], [], []>} : vector<8x16xf32>, vector<16x128xf32>, vector<8x128xf32> -> vector<8x128xf32>
    %c0_29 = arith.constant 0 : index
    %c0_30 = arith.constant 0 : index
    %c0_31 = arith.constant 0 : index
    %55 = vector.load %arg2[%c0_29, %c0_30, %c0_31] : memref<1x1x8xf32, #tpu.memory_space<vmem>>, vector<1x1x8xf32>
    %c0_i32 = arith.constant 0 : i32
    %c4_i32 = arith.constant 4 : i32
    %56 = arith.addi %c0_i32, %c4_i32 : i32
    %c1_i32 = arith.constant 1 : i32
    %57 = scf.for %arg29 = %c0_i32 to %56 step %c1_i32 iter_args(%arg30 = %54) -> (vector<8x128xf32>)  : i32 {
      %76 = arith.truncf %arg30 : vector<8x128xf32> to vector<8x128xbf16>
      %77 = vector.shape_cast %76 : vector<8x128xbf16> to vector<1x8x128xbf16>
      %78 = vector.shape_cast %77 : vector<1x8x128xbf16> to vector<1x8x128xbf16>
      %79 = vector.broadcast %78 : vector<1x8x128xbf16> to vector<8x8x128xbf16>
      %80 = arith.index_cast %arg29 : i32 to index
      %c0_43 = arith.constant 0 : index
      %c0_44 = arith.constant 0 : index
      %c0_45 = arith.constant 0 : index
      %81 = vector.load %arg11[%80, %c0_43, %c0_44, %c0_45] : memref<4x8x16x128xbf16, #tpu.memory_space<vmem>>, vector<1x8x16x128xbf16>
      %82 = vector.shape_cast %81 : vector<1x8x16x128xbf16> to vector<8x16x128xbf16>
      "tpu.trace_start"() <{level = 10 : i32, message = "htd,hkd->htk"}> : () -> ()
      %cst_46 = arith.constant dense<0.000000e+00> : vector<8x8x16xf32>
      %83 = tpu.matmul %79, %82, %cst_46 {dimension_numbers = #tpu.dot_dimension_numbers<[2], [2], [1], [1], [0, 0, 0, 1, 1, 1], [0], [0]>} : vector<8x8x128xbf16>, vector<8x16x128xbf16>, vector<8x8x16xf32> -> vector<8x8x16xf32>
      "tpu.trace_stop"() : () -> ()
      %84 = arith.index_cast %arg29 : i32 to index
      %c0_47 = arith.constant 0 : index
      %c0_48 = arith.constant 0 : index
      %c0_49 = arith.constant 0 : index
      %85 = vector.load %arg12[%84, %c0_47, %c0_48, %c0_49] : memref<4x8x1x16xf32, #tpu.memory_space<vmem>>, vector<1x8x1x16xf32>
      %86 = vector.shape_cast %85 : vector<1x8x1x16xf32> to vector<8x1x16xf32>
      %87 = vector.broadcast %86 : vector<8x1x16xf32> to vector<8x8x16xf32>
      %88 = arith.addf %83, %87 : vector<8x8x16xf32>
      %89 = arith.index_cast %arg29 : i32 to index
      %c0_50 = arith.constant 0 : index
      %c0_51 = arith.constant 0 : index
      %c0_52 = arith.constant 0 : index
      %90 = vector.load %arg13[%89, %c0_50, %c0_51, %c0_52] : memref<4x8x16x128xbf16, #tpu.memory_space<vmem>>, vector<1x8x16x128xbf16>
      %91 = vector.shape_cast %90 : vector<1x8x16x128xbf16> to vector<8x16x128xbf16>
      "tpu.trace_start"() <{level = 10 : i32, message = "htd,hkd->htk"}> : () -> ()
      %cst_53 = arith.constant dense<0.000000e+00> : vector<8x8x16xf32>
      %92 = tpu.matmul %79, %91, %cst_53 {dimension_numbers = #tpu.dot_dimension_numbers<[2], [2], [1], [1], [0, 0, 0, 1, 1, 1], [0], [0]>} : vector<8x8x128xbf16>, vector<8x16x128xbf16>, vector<8x8x16xf32> -> vector<8x8x16xf32>
      "tpu.trace_stop"() : () -> ()
      %93 = arith.index_cast %arg29 : i32 to index
      %c0_54 = arith.constant 0 : index
      %c0_55 = arith.constant 0 : index
      %c0_56 = arith.constant 0 : index
      %94 = vector.load %arg14[%93, %c0_54, %c0_55, %c0_56] : memref<4x8x1x16xf32, #tpu.memory_space<vmem>>, vector<1x8x1x16xf32>
      %95 = vector.shape_cast %94 : vector<1x8x1x16xf32> to vector<8x1x16xf32>
      %96 = vector.broadcast %95 : vector<8x1x16xf32> to vector<8x8x16xf32>
      %97 = arith.addf %92, %96 : vector<8x8x16xf32>
      %98 = arith.index_cast %arg29 : i32 to index
      %c0_57 = arith.constant 0 : index
      %c0_58 = arith.constant 0 : index
      %c0_59 = arith.constant 0 : index
      %99 = vector.load %arg15[%98, %c0_57, %c0_58, %c0_59] : memref<4x8x16x128xbf16, #tpu.memory_space<vmem>>, vector<1x8x16x128xbf16>
      %100 = vector.shape_cast %99 : vector<1x8x16x128xbf16> to vector<8x16x128xbf16>
      "tpu.trace_start"() <{level = 10 : i32, message = "htd,hkd->htk"}> : () -> ()
      %cst_60 = arith.constant dense<0.000000e+00> : vector<8x8x16xf32>
      %101 = tpu.matmul %79, %100, %cst_60 {dimension_numbers = #tpu.dot_dimension_numbers<[2], [2], [1], [1], [0, 0, 0, 1, 1, 1], [0], [0]>} : vector<8x8x128xbf16>, vector<8x16x128xbf16>, vector<8x8x16xf32> -> vector<8x8x16xf32>
      "tpu.trace_stop"() : () -> ()
      %102 = arith.index_cast %arg29 : i32 to index
      %c0_61 = arith.constant 0 : index
      %c0_62 = arith.constant 0 : index
      %c0_63 = arith.constant 0 : index
      %103 = vector.load %arg16[%102, %c0_61, %c0_62, %c0_63] : memref<4x8x1x16xf32, #tpu.memory_space<vmem>>, vector<1x8x1x16xf32>
      %104 = vector.shape_cast %103 : vector<1x8x1x16xf32> to vector<8x1x16xf32>
      %105 = vector.broadcast %104 : vector<8x1x16xf32> to vector<8x8x16xf32>
      %106 = arith.addf %101, %105 : vector<8x8x16xf32>
      %107 = arith.truncf %88 : vector<8x8x16xf32> to vector<8x8x16xbf16>
      %108 = arith.truncf %97 : vector<8x8x16xf32> to vector<8x8x16xbf16>
      "tpu.trace_start"() <{level = 10 : i32, message = "hqd,hkd->hqk"}> : () -> ()
      %cst_64 = arith.constant dense<0.000000e+00> : vector<8x8x8xf32>
      %109 = tpu.matmul %107, %108, %cst_64 {dimension_numbers = #tpu.dot_dimension_numbers<[2], [2], [1], [1], [0, 0, 0, 1, 1, 1], [0], [0]>} : vector<8x8x16xbf16>, vector<8x8x16xbf16>, vector<8x8x8xf32> -> vector<8x8x8xf32>
      "tpu.trace_stop"() : () -> ()
      %cst_65 = arith.constant 2.500000e-01 : f32
      %110 = vector.broadcast %cst_65 : f32 to vector<8x8x8xf32>
      %111 = arith.mulf %109, %110 : vector<8x8x8xf32>
      %112 = vector.broadcast %55 : vector<1x1x8xf32> to vector<8x8x8xf32>
      %113 = arith.addf %111, %112 : vector<8x8x8xf32>
      %cst_66 = arith.constant dense<0xFF800000> : vector<8x8xf32>
      %114 = vector.multi_reduction <maximumf>, %113, %cst_66 [2] : vector<8x8x8xf32> to vector<8x8xf32>
      %115 = vector.shape_cast %114 : vector<8x8xf32> to vector<8x8x1xf32>
      %116 = vector.broadcast %115 : vector<8x8x1xf32> to vector<8x8x8xf32>
      %117 = arith.subf %113, %116 : vector<8x8x8xf32>
      %118 = math.exp %117 : vector<8x8x8xf32>
      %cst_67 = arith.constant dense<0.000000e+00> : vector<8x8xf32>
      %119 = vector.multi_reduction <add>, %118, %cst_67 [2] : vector<8x8x8xf32> to vector<8x8xf32>
      %120 = vector.shape_cast %119 : vector<8x8xf32> to vector<8x8x1xf32>
      %121 = tpu.reciprocal %120 {approx = true} : vector<8x8x1xf32> -> vector<8x8x1xf32>
      %122 = vector.broadcast %121 : vector<8x8x1xf32> to vector<8x8x8xf32>
      %123 = arith.mulf %118, %122 : vector<8x8x8xf32>
      %124 = arith.truncf %123 : vector<8x8x8xf32> to vector<8x8x8xbf16>
      %125 = arith.truncf %106 : vector<8x8x16xf32> to vector<8x8x16xbf16>
      "tpu.trace_start"() <{level = 10 : i32, message = "hqk,hkd->hqd"}> : () -> ()
      %cst_68 = arith.constant dense<0.000000e+00> : vector<8x8x16xf32>
      %126 = tpu.matmul %124, %125, %cst_68 {dimension_numbers = #tpu.dot_dimension_numbers<[2], [1], [1], [2], [0, 0, 0, 1, 1, 2], [0], [0]>} : vector<8x8x8xbf16>, vector<8x8x16xbf16>, vector<8x8x16xf32> -> vector<8x8x16xf32>
      "tpu.trace_stop"() : () -> ()
      %127 = arith.truncf %126 : vector<8x8x16xf32> to vector<8x8x16xbf16>
      %128 = arith.index_cast %arg29 : i32 to index
      %c0_69 = arith.constant 0 : index
      %c0_70 = arith.constant 0 : index
      %c0_71 = arith.constant 0 : index
      %129 = vector.load %arg17[%128, %c0_69, %c0_70, %c0_71] : memref<4x8x16x128xbf16, #tpu.memory_space<vmem>>, vector<1x8x16x128xbf16>
      %130 = vector.shape_cast %129 : vector<1x8x16x128xbf16> to vector<8x16x128xbf16>
      "tpu.trace_start"() <{level = 10 : i32, message = "htd,hdm->htm"}> : () -> ()
      %cst_72 = arith.constant dense<0.000000e+00> : vector<8x8x128xf32>
      %131 = tpu.matmul %127, %130, %cst_72 {dimension_numbers = #tpu.dot_dimension_numbers<[2], [1], [1], [2], [0, 0, 0, 1, 1, 2], [0], [0]>} : vector<8x8x16xbf16>, vector<8x16x128xbf16>, vector<8x8x128xf32> -> vector<8x8x128xf32>
      "tpu.trace_stop"() : () -> ()
      %cst_73 = arith.constant dense<0.000000e+00> : vector<8x128xf32>
      %132 = vector.multi_reduction <add>, %131, %cst_73 [0] : vector<8x8x128xf32> to vector<8x128xf32>
      %133 = arith.index_cast %arg29 : i32 to index
      %c0_74 = arith.constant 0 : index
      %c0_75 = arith.constant 0 : index
      %134 = vector.load %arg18[%133, %c0_74, %c0_75] : memref<4x1x128xf32, #tpu.memory_space<vmem>>, vector<1x1x128xf32>
      %135 = vector.shape_cast %134 : vector<1x1x128xf32> to vector<1x128xf32>
      %136 = vector.broadcast %135 : vector<1x128xf32> to vector<8x128xf32>
      %137 = arith.addf %132, %136 : vector<8x128xf32>
      %138 = arith.addf %137, %arg30 : vector<8x128xf32>
      %139 = arith.index_cast %arg29 : i32 to index
      %c0_76 = arith.constant 0 : index
      %c0_77 = arith.constant 0 : index
      %140 = vector.load %arg19[%139, %c0_76, %c0_77] : memref<4x1x128xf32, #tpu.memory_space<vmem>>, vector<1x1x128xf32>
      %141 = vector.shape_cast %140 : vector<1x1x128xf32> to vector<1x128xf32>
      %142 = arith.index_cast %arg29 : i32 to index
      %c0_78 = arith.constant 0 : index
      %c0_79 = arith.constant 0 : index
      %143 = vector.load %arg20[%142, %c0_78, %c0_79] : memref<4x1x128xf32, #tpu.memory_space<vmem>>, vector<1x1x128xf32>
      %144 = vector.shape_cast %143 : vector<1x1x128xf32> to vector<1x128xf32>
      %cst_80 = arith.constant dense<0.000000e+00> : vector<8xf32>
      %145 = vector.multi_reduction <add>, %138, %cst_80 [1] : vector<8x128xf32> to vector<8xf32>
      %146 = vector.shape_cast %145 : vector<8xf32> to vector<8x1xf32>
      %cst_81 = arith.constant 1.280000e+02 : f32
      %147 = vector.broadcast %cst_81 : f32 to vector<8x1xf32>
      %148 = arith.divf %146, %147 : vector<8x1xf32>
      %149 = vector.broadcast %148 : vector<8x1xf32> to vector<8x128xf32>
      %150 = arith.subf %138, %149 : vector<8x128xf32>
      %151 = arith.mulf %150, %150 : vector<8x128xf32>
      %cst_82 = arith.constant dense<0.000000e+00> : vector<8xf32>
      %152 = vector.multi_reduction <add>, %151, %cst_82 [1] : vector<8x128xf32> to vector<8xf32>
      %153 = vector.shape_cast %152 : vector<8xf32> to vector<8x1xf32>
      %cst_83 = arith.constant 0.00787401571 : f32
      %154 = vector.broadcast %cst_83 : f32 to vector<8x1xf32>
      %155 = arith.mulf %153, %154 : vector<8x1xf32>
      %156 = math.sqrt %155 : vector<8x1xf32>
      %157 = vector.broadcast %141 : vector<1x128xf32> to vector<8x128xf32>
      %158 = arith.mulf %157, %150 : vector<8x128xf32>
      %cst_84 = arith.constant 9.99999997E-7 : f32
      %159 = vector.broadcast %cst_84 : f32 to vector<8x1xf32>
      %160 = arith.addf %156, %159 : vector<8x1xf32>
      %161 = vector.broadcast %160 : vector<8x1xf32> to vector<8x128xf32>
      %162 = arith.divf %158, %161 : vector<8x128xf32>
      %163 = vector.broadcast %144 : vector<1x128xf32> to vector<8x128xf32>
      %164 = arith.addf %162, %163 : vector<8x128xf32>
      %165 = arith.truncf %164 : vector<8x128xf32> to vector<8x128xbf16>
      %166 = arith.index_cast %arg29 : i32 to index
      %c0_85 = arith.constant 0 : index
      %c0_86 = arith.constant 0 : index
      %167 = vector.load %arg21[%166, %c0_85, %c0_86] : memref<4x128x128xbf16, #tpu.memory_space<vmem>>, vector<1x128x128xbf16>
      %168 = vector.shape_cast %167 : vector<1x128x128xbf16> to vector<128x128xbf16>
      %cst_87 = arith.constant dense<0.000000e+00> : vector<8x128xf32>
      %169 = tpu.matmul %165, %168, %cst_87 {dimension_numbers = #tpu.dot_dimension_numbers<[1], [0], [0], [1], [0, 0, 1, 1], [], []>} : vector<8x128xbf16>, vector<128x128xbf16>, vector<8x128xf32> -> vector<8x128xf32>
      %170 = arith.index_cast %arg29 : i32 to index
      %c0_88 = arith.constant 0 : index
      %c0_89 = arith.constant 0 : index
      %171 = vector.load %arg22[%170, %c0_88, %c0_89] : memref<4x1x128xf32, #tpu.memory_space<vmem>>, vector<1x1x128xf32>
      %172 = vector.shape_cast %171 : vector<1x1x128xf32> to vector<1x128xf32>
      %173 = vector.broadcast %172 : vector<1x128xf32> to vector<8x128xf32>
      %174 = arith.addf %169, %173 : vector<8x128xf32>
      %cst_90 = arith.constant 0.000000e+00 : f32
      %175 = vector.broadcast %cst_90 : f32 to vector<8x128xf32>
      %176 = arith.maximumf %174, %175 : vector<8x128xf32>
      %177 = arith.truncf %176 : vector<8x128xf32> to vector<8x128xbf16>
      %178 = arith.index_cast %arg29 : i32 to index
      %c0_91 = arith.constant 0 : index
      %c0_92 = arith.constant 0 : index
      %179 = vector.load %arg23[%178, %c0_91, %c0_92] : memref<4x128x128xbf16, #tpu.memory_space<vmem>>, vector<1x128x128xbf16>
      %180 = vector.shape_cast %179 : vector<1x128x128xbf16> to vector<128x128xbf16>
      %cst_93 = arith.constant dense<0.000000e+00> : vector<8x128xf32>
      %181 = tpu.matmul %177, %180, %cst_93 {dimension_numbers = #tpu.dot_dimension_numbers<[1], [0], [0], [1], [0, 0, 1, 1], [], []>} : vector<8x128xbf16>, vector<128x128xbf16>, vector<8x128xf32> -> vector<8x128xf32>
      %182 = arith.index_cast %arg29 : i32 to index
      %c0_94 = arith.constant 0 : index
      %c0_95 = arith.constant 0 : index
      %183 = vector.load %arg24[%182, %c0_94, %c0_95] : memref<4x1x128xf32, #tpu.memory_space<vmem>>, vector<1x1x128xf32>
      %184 = vector.shape_cast %183 : vector<1x1x128xf32> to vector<1x128xf32>
      %185 = vector.broadcast %184 : vector<1x128xf32> to vector<8x128xf32>
      %186 = arith.addf %181, %185 : vector<8x128xf32>
      %187 = arith.addf %186, %164 : vector<8x128xf32>
      %188 = arith.index_cast %arg29 : i32 to index
      %c0_96 = arith.constant 0 : index
      %c0_97 = arith.constant 0 : index
      %189 = vector.load %arg25[%188, %c0_96, %c0_97] : memref<4x1x128xf32, #tpu.memory_space<vmem>>, vector<1x1x128xf32>
      %190 = vector.shape_cast %189 : vector<1x1x128xf32> to vector<1x128xf32>
      %191 = arith.index_cast %arg29 : i32 to index
      %c0_98 = arith.constant 0 : index
      %c0_99 = arith.constant 0 : index
      %192 = vector.load %arg26[%191, %c0_98, %c0_99] : memref<4x1x128xf32, #tpu.memory_space<vmem>>, vector<1x1x128xf32>
      %193 = vector.shape_cast %192 : vector<1x1x128xf32> to vector<1x128xf32>
      %cst_100 = arith.constant dense<0.000000e+00> : vector<8xf32>
      %194 = vector.multi_reduction <add>, %187, %cst_100 [1] : vector<8x128xf32> to vector<8xf32>
      %195 = vector.shape_cast %194 : vector<8xf32> to vector<8x1xf32>
      %cst_101 = arith.constant 1.280000e+02 : f32
      %196 = vector.broadcast %cst_101 : f32 to vector<8x1xf32>
      %197 = arith.divf %195, %196 : vector<8x1xf32>
      %198 = vector.broadcast %197 : vector<8x1xf32> to vector<8x128xf32>
      %199 = arith.subf %187, %198 : vector<8x128xf32>
      %200 = arith.mulf %199, %199 : vector<8x128xf32>
      %cst_102 = arith.constant dense<0.000000e+00> : vector<8xf32>
      %201 = vector.multi_reduction <add>, %200, %cst_102 [1] : vector<8x128xf32> to vector<8xf32>
      %202 = vector.shape_cast %201 : vector<8xf32> to vector<8x1xf32>
      %cst_103 = arith.constant 0.00787401571 : f32
      %203 = vector.broadcast %cst_103 : f32 to vector<8x1xf32>
      %204 = arith.mulf %202, %203 : vector<8x1xf32>
      %205 = math.sqrt %204 : vector<8x1xf32>
      %206 = vector.broadcast %190 : vector<1x128xf32> to vector<8x128xf32>
      %207 = arith.mulf %206, %199 : vector<8x128xf32>
      %cst_104 = arith.constant 9.99999997E-7 : f32
      %208 = vector.broadcast %cst_104 : f32 to vector<8x1xf32>
      %209 = arith.addf %205, %208 : vector<8x1xf32>
      %210 = vector.broadcast %209 : vector<8x1xf32> to vector<8x128xf32>
      %211 = arith.divf %207, %210 : vector<8x128xf32>
      %212 = vector.broadcast %193 : vector<1x128xf32> to vector<8x128xf32>
      %213 = arith.addf %211, %212 : vector<8x128xf32>
      scf.yield %213 : vector<8x128xf32>
    }
    %c4_i32_32 = arith.constant 4 : i32
    %cst_33 = arith.constant dense<0.000000e+00> : vector<128xf32>
    %58 = vector.multi_reduction <add>, %57, %cst_33 [0] : vector<8x128xf32> to vector<128xf32>
    %59 = vector.shape_cast %58 : vector<128xf32> to vector<1x128xf32>
    %cst_34 = arith.constant 8.000000e+00 : f32
    %60 = vector.broadcast %cst_34 : f32 to vector<1x128xf32>
    %61 = arith.divf %59, %60 : vector<1x128xf32>
    %62 = vector.broadcast %61 : vector<1x128xf32> to vector<8x128xf32>
    %63 = arith.subf %57, %62 : vector<8x128xf32>
    %64 = arith.mulf %63, %63 : vector<8x128xf32>
    %cst_35 = arith.constant dense<0.000000e+00> : vector<128xf32>
    %65 = vector.multi_reduction <add>, %64, %cst_35 [0] : vector<8x128xf32> to vector<128xf32>
    %66 = vector.shape_cast %65 : vector<128xf32> to vector<1x128xf32>
    %cst_36 = arith.constant 0.142857149 : f32
    %67 = vector.broadcast %cst_36 : f32 to vector<1x128xf32>
    %68 = arith.mulf %66, %67 : vector<1x128xf32>
    %c0_37 = arith.constant 0 : index
    %c0_38 = arith.constant 0 : index
    %c0_39 = arith.constant 0 : index
    %69 = vector.load %arg27[%c0_37, %c0_38, %c0_39] : memref<1x1x128xf32, #tpu.memory_space<vmem>>, vector<1x1x128xf32>
    %70 = vector.shape_cast %69 : vector<1x1x128xf32> to vector<1x128xf32>
    %71 = vector.shape_cast %61 : vector<1x128xf32> to vector<1x1x128xf32>
    tpu.vector_store %arg27[%c0_37, %c0_38, %c0_39], %71 {strides = array<i32>} : memref<1x1x128xf32, #tpu.memory_space<vmem>>, vector<1x1x128xf32>,
    %72 = math.sqrt %68 : vector<1x128xf32>
    %c0_40 = arith.constant 0 : index
    %c0_41 = arith.constant 0 : index
    %c0_42 = arith.constant 0 : index
    %73 = vector.load %arg28[%c0_40, %c0_41, %c0_42] : memref<1x1x128xf32, #tpu.memory_space<vmem>>, vector<1x1x128xf32>
    %74 = vector.shape_cast %73 : vector<1x1x128xf32> to vector<1x128xf32>
    %75 = vector.shape_cast %72 : vector<1x128xf32> to vector<1x1x128xf32>
    tpu.vector_store %arg28[%c0_40, %c0_41, %c0_42], %75 {strides = array<i32>} : memref<1x1x128xf32, #tpu.memory_space<vmem>>, vector<1x1x128xf32>,
    return
  }
  func.func @transform_0(%arg0: i32) -> (i32, i32, i32) {
    %c0_i32 = arith.constant 0 : i32
    %c0_i32_0 = arith.constant 0 : i32
    %c0_i32_1 = arith.constant 0 : i32
    return %arg0, %c0_i32, %c0_i32_0 : i32, i32, i32
  }
  func.func @transform_1(%arg0: i32) -> (i32, i32, i32) {
    %c0_i32 = arith.constant 0 : i32
    %c0_i32_0 = arith.constant 0 : i32
    %c0_i32_1 = arith.constant 0 : i32
    return %arg0, %c0_i32, %c0_i32_0 : i32, i32, i32
  }
  func.func @transform_2(%arg0: i32) -> (i32, i32) {
    %c0_i32 = arith.constant 0 : i32
    %c0_i32_0 = arith.constant 0 : i32
    %c0_i32_1 = arith.constant 0 : i32
    return %c0_i32, %c0_i32_0 : i32, i32
  }
  func.func @transform_3(%arg0: i32) -> (i32, i32) {
    %c0_i32 = arith.constant 0 : i32
    %c0_i32_0 = arith.constant 0 : i32
    %c0_i32_1 = arith.constant 0 : i32
    return %c0_i32, %c0_i32_0 : i32, i32
  }
  func.func @transform_4(%arg0: i32) -> (i32, i32) {
    %c0_i32 = arith.constant 0 : i32
    %c0_i32_0 = arith.constant 0 : i32
    %c0_i32_1 = arith.constant 0 : i32
    return %c0_i32, %c0_i32_0 : i32, i32
  }
  func.func @transform_5(%arg0: i32) -> (i32, i32) {
    %c0_i32 = arith.constant 0 : i32
    %c0_i32_0 = arith.constant 0 : i32
    %c0_i32_1 = arith.constant 0 : i32
    return %c0_i32, %c0_i32_0 : i32, i32
  }
  func.func @transform_6(%arg0: i32) -> (i32, i32) {
    %c0_i32 = arith.constant 0 : i32
    %c0_i32_0 = arith.constant 0 : i32
    %c0_i32_1 = arith.constant 0 : i32
    return %c0_i32, %c0_i32_0 : i32, i32
  }
  func.func @transform_7(%arg0: i32) -> (i32, i32) {
    %c0_i32 = arith.constant 0 : i32
    %c0_i32_0 = arith.constant 0 : i32
    %c0_i32_1 = arith.constant 0 : i32
    return %c0_i32, %c0_i32_0 : i32, i32
  }
  func.func @transform_8(%arg0: i32) -> (i32, i32) {
    %c0_i32 = arith.constant 0 : i32
    %c0_i32_0 = arith.constant 0 : i32
    %c0_i32_1 = arith.constant 0 : i32
    return %c0_i32, %c0_i32_0 : i32, i32
  }
  func.func @transform_9(%arg0: i32) -> (i32, i32) {
    %c0_i32 = arith.constant 0 : i32
    %c0_i32_0 = arith.constant 0 : i32
    %c0_i32_1 = arith.constant 0 : i32
    return %c0_i32, %c0_i32_0 : i32, i32
  }
  func.func @transform_10(%arg0: i32) -> (i32, i32, i32, i32) {
    %c0_i32 = arith.constant 0 : i32
    %c0_i32_0 = arith.constant 0 : i32
    %c0_i32_1 = arith.constant 0 : i32
    %c0_i32_2 = arith.constant 0 : i32
    %c0_i32_3 = arith.constant 0 : i32
    return %c0_i32, %c0_i32_0, %c0_i32_1, %c0_i32_2 : i32, i32, i32, i32
  }
  func.func @transform_11(%arg0: i32) -> (i32, i32, i32, i32) {
    %c0_i32 = arith.constant 0 : i32
    %c0_i32_0 = arith.constant 0 : i32
    %c0_i32_1 = arith.constant 0 : i32
    %c0_i32_2 = arith.constant 0 : i32
    %c0_i32_3 = arith.constant 0 : i32
    return %c0_i32, %c0_i32_0, %c0_i32_1, %c0_i32_2 : i32, i32, i32, i32
  }
  func.func @transform_12(%arg0: i32) -> (i32, i32, i32, i32) {
    %c0_i32 = arith.constant 0 : i32
    %c0_i32_0 = arith.constant 0 : i32
    %c0_i32_1 = arith.constant 0 : i32
    %c0_i32_2 = arith.constant 0 : i32
    %c0_i32_3 = arith.constant 0 : i32
    return %c0_i32, %c0_i32_0, %c0_i32_1, %c0_i32_2 : i32, i32, i32, i32
  }
  func.func @transform_13(%arg0: i32) -> (i32, i32, i32, i32) {
    %c0_i32 = arith.constant 0 : i32
    %c0_i32_0 = arith.constant 0 : i32
    %c0_i32_1 = arith.constant 0 : i32
    %c0_i32_2 = arith.constant 0 : i32
    %c0_i32_3 = arith.constant 0 : i32
    return %c0_i32, %c0_i32_0, %c0_i32_1, %c0_i32_2 : i32, i32, i32, i32
  }
  func.func @transform_14(%arg0: i32) -> (i32, i32, i32, i32) {
    %c0_i32 = arith.constant 0 : i32
    %c0_i32_0 = arith.constant 0 : i32
    %c0_i32_1 = arith.constant 0 : i32
    %c0_i32_2 = arith.constant 0 : i32
    %c0_i32_3 = arith.constant 0 : i32
    return %c0_i32, %c0_i32_0, %c0_i32_1, %c0_i32_2 : i32, i32, i32, i32
  }
  func.func @transform_15(%arg0: i32) -> (i32, i32, i32, i32) {
    %c0_i32 = arith.constant 0 : i32
    %c0_i32_0 = arith.constant 0 : i32
    %c0_i32_1 = arith.constant 0 : i32
    %c0_i32_2 = arith.constant 0 : i32
    %c0_i32_3 = arith.constant 0 : i32
    return %c0_i32, %c0_i32_0, %c0_i32_1, %c0_i32_2 : i32, i32, i32, i32
  }
  func.func @transform_16(%arg0: i32) -> (i32, i32, i32, i32) {
    %c0_i32 = arith.constant 0 : i32
    %c0_i32_0 = arith.constant 0 : i32
    %c0_i32_1 = arith.constant 0 : i32
    %c0_i32_2 = arith.constant 0 : i32
    %c0_i32_3 = arith.constant 0 : i32
    return %c0_i32, %c0_i32_0, %c0_i32_1, %c0_i32_2 : i32, i32, i32, i32
  }
  func.func @transform_17(%arg0: i32) -> (i32, i32, i32) {
    %c0_i32 = arith.constant 0 : i32
    %c0_i32_0 = arith.constant 0 : i32
    %c0_i32_1 = arith.constant 0 : i32
    %c0_i32_2 = arith.constant 0 : i32
    return %c0_i32, %c0_i32_0, %c0_i32_1 : i32, i32, i32
  }
  func.func @transform_18(%arg0: i32) -> (i32, i32, i32) {
    %c0_i32 = arith.constant 0 : i32
    %c0_i32_0 = arith.constant 0 : i32
    %c0_i32_1 = arith.constant 0 : i32
    %c0_i32_2 = arith.constant 0 : i32
    return %c0_i32, %c0_i32_0, %c0_i32_1 : i32, i32, i32
  }
  func.func @transform_19(%arg0: i32) -> (i32, i32, i32) {
    %c0_i32 = arith.constant 0 : i32
    %c0_i32_0 = arith.constant 0 : i32
    %c0_i32_1 = arith.constant 0 : i32
    %c0_i32_2 = arith.constant 0 : i32
    return %c0_i32, %c0_i32_0, %c0_i32_1 : i32, i32, i32
  }
  func.func @transform_20(%arg0: i32) -> (i32, i32, i32) {
    %c0_i32 = arith.constant 0 : i32
    %c0_i32_0 = arith.constant 0 : i32
    %c0_i32_1 = arith.constant 0 : i32
    %c0_i32_2 = arith.constant 0 : i32
    return %c0_i32, %c0_i32_0, %c0_i32_1 : i32, i32, i32
  }
  func.func @transform_21(%arg0: i32) -> (i32, i32, i32) {
    %c0_i32 = arith.constant 0 : i32
    %c0_i32_0 = arith.constant 0 : i32
    %c0_i32_1 = arith.constant 0 : i32
    %c0_i32_2 = arith.constant 0 : i32
    return %c0_i32, %c0_i32_0, %c0_i32_1 : i32, i32, i32
  }
  func.func @transform_22(%arg0: i32) -> (i32, i32, i32) {
    %c0_i32 = arith.constant 0 : i32
    %c0_i32_0 = arith.constant 0 : i32
    %c0_i32_1 = arith.constant 0 : i32
    %c0_i32_2 = arith.constant 0 : i32
    return %c0_i32, %c0_i32_0, %c0_i32_1 : i32, i32, i32
  }
  func.func @transform_23(%arg0: i32) -> (i32, i32, i32) {
    %c0_i32 = arith.constant 0 : i32
    %c0_i32_0 = arith.constant 0 : i32
    %c0_i32_1 = arith.constant 0 : i32
    %c0_i32_2 = arith.constant 0 : i32
    return %c0_i32, %c0_i32_0, %c0_i32_1 : i32, i32, i32
  }
  func.func @transform_24(%arg0: i32) -> (i32, i32, i32) {
    %c0_i32 = arith.constant 0 : i32
    %c0_i32_0 = arith.constant 0 : i32
    %c0_i32_1 = arith.constant 0 : i32
    %c0_i32_2 = arith.constant 0 : i32
    return %c0_i32, %c0_i32_0, %c0_i32_1 : i32, i32, i32
  }
  func.func @transform_25(%arg0: i32) -> (i32, i32, i32) {
    %c0_i32 = arith.constant 0 : i32
    %c0_i32_0 = arith.constant 0 : i32
    %c0_i32_1 = arith.constant 0 : i32
    %c0_i32_2 = arith.constant 0 : i32
    return %c0_i32, %c0_i32_0, %c0_i32_1 : i32, i32, i32
  }
  func.func @transform_26(%arg0: i32) -> (i32, i32, i32) {
    %c0_i32 = arith.constant 0 : i32
    %c0_i32_0 = arith.constant 0 : i32
    %c0_i32_1 = arith.constant 0 : i32
    return %arg0, %c0_i32, %c0_i32_0 : i32, i32, i32
  }
  func.func @transform_27(%arg0: i32) -> (i32, i32, i32) {
    %c0_i32 = arith.constant 0 : i32
    %c0_i32_0 = arith.constant 0 : i32
    %c0_i32_1 = arith.constant 0 : i32
    return %arg0, %c0_i32, %c0_i32_0 : i32, i32, i32
  }
}

</mosaic_0001>

<bundles_post_ra>
// kernel: tile.9
= control target key start
LH: loop header
LB: loop body
LE: loop exit
PB: predicated region body
PF: predicated region fallthrough
CT: control target
= control target key end

     0   :  { %vm4_vm0 = vcmask 1047556   ;;  %s209_s14 = smov 96   ;;  %s210_s15 = smov 112   ;;  %vm6_vm1 = vcmask 130048   ;;  %vm25_vm2 = vcmask 1048448   ;;  %vm46_vm3 = vcmask 917248   ;;  %s386_s0 = inlined_call_operand.vmem [shape: f32[16,8,16], index: 0, kind: input, shape index: {}]   ;;  %s387_s1 = inlined_call_operand.vmem [shape: f32[16,128], index: 1, kind: output, shape index: {}]  }
   0x1   :  { %v172_v0 = vld [vmem:[%s386_s0 + $0x6] ss:$8 sm:$0xf]   ;;  %v167_v3 = vld [vmem:[%s386_s0 + $0x7] ss:$8 sm:$0xf]  }
   0x2   :  { %v173_v1 = vld [vmem:[%s386_s0 + $0x6] ss:$8 sm:$0xf0]   ;;  %v168_v4 = vld [vmem:[%s386_s0 + $0x7] ss:$8 sm:$0xf0]  }
   0x3   :  { %v43_v2 = vsel %vm4_vm0, %v173_v1, %v172_v0  ;;  %v22_v5 = vsel %vm4_vm0, %v168_v4, %v167_v3  ;;  %v174_v6 = vld [vmem:[%s386_s0 + $0x46] ss:$8 sm:$0xf]   ;;  %v169_v8 = vld [vmem:[%s386_s0 + $0x47] ss:$8 sm:$0xf]  }
   0x4   :  { %44 = vrot.lane.b32.xlu1 %v43_v2, %s209_s14  ;;  %23 = vrot.lane.b32.xlu0 %v22_v5, %s210_s15  ;;  %v175_v7 = vld [vmem:[%s386_s0 + $0x46] ss:$8 sm:$0xf0]   ;;  %v170_v9 = vld [vmem:[%s386_s0 + $0x47] ss:$8 sm:$0xf0]  }
   0x5   :  { %v53_v10 = vsel %vm4_vm0, %v175_v7, %v174_v6  ;;  %v32_v11 = vsel %vm4_vm0, %v170_v9, %v169_v8  ;;  %v177_v12 = vld [vmem:[%s386_s0 + $0x5] ss:$8 sm:$0xf]   ;;  %v184_v15 = vld [vmem:[%s386_s0 + $0x44] ss:$8 sm:$0xf]  }
   0x6   :  { %v178_v13 = vld [vmem:[%s386_s0 + $0x5] ss:$8 sm:$0xf0]   ;;  %v185_v16 = vld [vmem:[%s386_s0 + $0x44] ss:$8 sm:$0xf0]  }
   0x7   :  { %v64_v14 = vsel %vm4_vm0, %v178_v13, %v177_v12  ;;  %s211_s3 = smov 80   ;;  %v182_v17 = vld [vmem:[%s386_s0 + $0x4] ss:$8 sm:$0xf]   ;;  %v95_v21 = vsel %vm4_vm0, %v185_v16, %v184_v15  ;;  %s212_s12 = smov 64   ;;  %vm67_vm4 = vcmask 786048  }
   0x8   :  { %65 = vrot.lane.b32.xlu2 %v64_v14, %s211_s3  ;;  %v183_v18 = vld [vmem:[%s386_s0 + $0x4] ss:$8 sm:$0xf0]   ;;  %v179_v19 = vld [vmem:[%s386_s0 + $0x45] ss:$8 sm:$0xf]  }
   0x9   :  { %v180_v20 = vld [vmem:[%s386_s0 + $0x45] ss:$8 sm:$0xf0]   ;;  %v85_v22 = vsel %vm4_vm0, %v183_v18, %v182_v17  ;;  %v192_v24 = vld [vmem:[%s386_s0 + $0x2] ss:$8 sm:$0xf]  }
   0xa   :  { %v74_v23 = vsel %vm4_vm0, %v180_v20, %v179_v19  ;;  %v193_v25 = vld [vmem:[%s386_s0 + $0x2] ss:$8 sm:$0xf0]   ;;  %v189_v26 = vld [vmem:[%s386_s0 + $0x43] ss:$8 sm:$0xf]  }
   0xb   :  { %v190_v27 = vld [vmem:[%s386_s0 + $0x43] ss:$8 sm:$0xf0]   ;;  %v127_v30 = vsel %vm4_vm0, %v193_v25, %v192_v24  ;;  %s213_s25 = smov 32   ;;  %s214_s26 = smov 48   ;;  %vm88_vm5 = vcmask 654848  }
   0xc   :  { %54 = vrot.lane.b32.xlu1 %v53_v10, %s209_s14  ;;  %33 = vrot.lane.b32.xlu0 %v32_v11, %s210_s15  ;;  %v187_v28 = vld [vmem:[%s386_s0 + $0x3] ss:$8 sm:$0xf]   ;;  %v116_v31 = vsel %vm4_vm0, %v190_v27, %v189_v26  ;;  %v199_v33 = vld [vmem:[%s386_s0 + $0x41] ss:$8 sm:$0xf]  }
   0xd   :  { %v188_v29 = vld [vmem:[%s386_s0 + $0x3] ss:$8 sm:$0xf0]   ;;  %v200_v34 = vld [vmem:[%s386_s0 + $0x41] ss:$8 sm:$0xf0]  }
   0xe   :  { %v106_v32 = vsel %vm4_vm0, %v188_v29, %v187_v28  ;;  %v197_v35 = vld [vmem:[%s386_s0 + $0x1] ss:$8 sm:$0xf]   ;;  %v194_v37 = vld [vmem:[%s386_s0 + $0x42] ss:$8 sm:$0xf]   ;;  %v158_v39 = vsel %vm4_vm0, %v200_v34, %v199_v33 }
   0xf   :  { %v198_v36 = vld [vmem:[%s386_s0 + $0x1] ss:$8 sm:$0xf0]   ;;  %v195_v38 = vld [vmem:[%s386_s0 + $0x42] ss:$8 sm:$0xf0]  }
  0x10   :  { %75 = vrot.lane.b32.xlu2 %v74_v23, %s211_s3  ;;  %v148_v40 = vsel %vm4_vm0, %v198_v36, %v197_v35  ;;  %v137_v41 = vsel %vm4_vm0, %v195_v38, %v194_v37  ;;  %s215_s10 = smov 16   ;;  %v2_v42 = vld [vmem:[%s386_s0] ss:$8 sm:$0xf]   ;;  %vm109_vm6 = vcmask 523648   ;;  %vm130_vm7 = vcmask 392448  }
  0x11   :  { %v3_v43 = vld [vmem:[%s386_s0] ss:$8 sm:$0xf0]   ;;  %vm151_vm8 = vcmask 261248  }
  0x12   :  { %v5_v44 = vsel %vm4_vm0, %v3_v43, %v2_v42  ;;  %v164_v45 = vld [vmem:[%s386_s0 + $0x40] ss:$8 sm:$0xf]  }
  0x13   :  { %7 = vst.msk [vmem:[%s387_s1] sm:$0xff] %vm6_vm1, %v5_v44   ;;  %v165_v46 = vld [vmem:[%s386_s0 + $0x40] ss:$8 sm:$0xf0]  }
  0x14   :  { %96 = vrot.lane.b32.xlu1 %v95_v21, %s212_s12  ;;  %86 = vrot.lane.b32.xlu0 %v85_v22, %s212_s12  ;;  %v13_v47 = vsel %vm4_vm0, %v165_v46, %v164_v45 }
  0x15   :  { %166 = vst.msk [vmem:[%s387_s1 + $0x8] sm:$0xff] %vm6_vm1, %v13_v47  }
  0x18   :  { %107 = vrot.lane.b32.xlu2 %v106_v32, %s214_s26 }
  0x1c   :  { %128 = vrot.lane.b32.xlu1 %v127_v30, %s213_s25  ;;  %117 = vrot.lane.b32.xlu0 %v116_v31, %s214_s26 }
  0x20   :  { %138 = vrot.lane.b32.xlu2 %v137_v41, %s213_s25 }
  0x24   :  { %159 = vrot.lane.b32.xlu1 %v158_v39, %s215_s10  ;;  %149 = vrot.lane.b32.xlu0 %v148_v40, %s215_s10 }
  0x62   :  { %v66_v48 = vpop.permute.xlu2 %65  }
  0x6a   :  { %v76_v49 = vpop.permute.xlu2 %75  }
  0x72   :  { %v108_v52 = vpop.permute.xlu2 %107  }
  0x76   :  { %v45_v50 = vpop.permute.xlu1 %44   ;;  %v24_v51 = vpop.permute.xlu0 %23  }
  0x77   :  { %26 = vst.msk [vmem:[%s387_s1] sm:$0xff] %vm25_vm2, %v24_v51  }
  0x78   :  { %47 = vst.msk [vmem:[%s387_s1] sm:$0xff] %vm46_vm3, %v45_v50  }
  0x79   :  { %68 = vst.msk [vmem:[%s387_s1] sm:$0xff] %vm67_vm4, %v66_v48  }
  0x7a   :  { %v139_v55 = vpop.permute.xlu2 %138  }
  0x7e   :  { %v55_v53 = vpop.permute.xlu1 %54   ;;  %v34_v54 = vpop.permute.xlu0 %33  }
  0x7f   :  { %171 = vst.msk [vmem:[%s387_s1 + $0x8] sm:$0xff] %vm25_vm2, %v34_v54  }
  0x80   :  { %176 = vst.msk [vmem:[%s387_s1 + $0x8] sm:$0xff] %vm46_vm3, %v55_v53  }
  0x81   :  { %181 = vst.msk [vmem:[%s387_s1 + $0x8] sm:$0xff] %vm67_vm4, %v76_v49  }
  0x86   :  { %v97_v56 = vpop.permute.xlu1 %96   ;;  %v87_v57 = vpop.permute.xlu0 %86  }
  0x87   :  { %186 = vst.msk [vmem:[%s387_s1 + $0x8] sm:$0xff] %vm88_vm5, %v97_v56  }
  0x88   :  { %89 = vst.msk [vmem:[%s387_s1] sm:$0xff] %vm88_vm5, %v87_v57  }
  0x89   :  { %110 = vst.msk [vmem:[%s387_s1] sm:$0xff] %vm109_vm6, %v108_v52  }
  0x8e   :  { %v129_v58 = vpop.permute.xlu1 %128   ;;  %v118_v59 = vpop.permute.xlu0 %117  }
  0x8f   :  { %131 = vst.msk [vmem:[%s387_s1] sm:$0xff] %vm130_vm7, %v129_v58  }
  0x90   :  { %191 = vst.msk [vmem:[%s387_s1 + $0x8] sm:$0xff] %vm109_vm6, %v118_v59  }
  0x91   :  { %196 = vst.msk [vmem:[%s387_s1 + $0x8] sm:$0xff] %vm130_vm7, %v139_v55  }
  0x96   :  { %v160_v60 = vpop.permute.xlu1 %159   ;;  %v150_v61 = vpop.permute.xlu0 %149  }
  0x97   :  { %201 = vst.msk [vmem:[%s387_s1 + $0x8] sm:$0xff] %vm151_vm8, %v160_v60  }
  0x98   :  { %152 = vst.msk [vmem:[%s387_s1] sm:$0xff] %vm151_vm8, %v150_v61  }

// kernel: transformer_e2e_lid_forward.1
= control target key start
LH: loop header
LB: loop body
LE: loop exit
PB: predicated region body
PF: predicated region fallthrough
CT: control target
= control target key end

     0   :  { %s4578_s0 = inlined_call_operand.vmem [shape: f32[2,8,20], index: 0, kind: input, shape index: {}]   ;;  %s4579_s1 = inlined_call_operand.vmem [shape: f32[2,1,8], index: 1, kind: input, shape index: {}]   ;;  %s4580_s2 = inlined_call_operand.vmem [shape: f32[20,16], index: 2, kind: input, shape index: {}]   ;;  %s4581_s3 = inlined_call_operand.hbm [shape: f32[1,16], index: 3, kind: input, shape index: {}]   ;;  %s4582_s4 = inlined_call_operand.hbm [shape: f32[1,16], index: 4, kind: input, shape index: {}]   ;;  %s4583_s5 = inlined_call_operand.hbm [shape: f32[1,16], index: 5, kind: input, shape index: {}]   ;;  %s4584_s6 = inlined_call_operand.vmem [shape: f32[8,16], index: 6, kind: input, shape index: {}]   ;;  %s4585_s7 = inlined_call_operand.hbm [shape: f32[1,16], index: 7, kind: input, shape index: {}]   ;;  %s4586_s8 = inlined_call_operand.hbm [shape: f32[1,16], index: 8, kind: input, shape index: {}]   ;;  %s4587_s9 = inlined_call_operand.vmem [shape: f32[16,128], index: 9, kind: input, shape index: {}]   ;;  %s4588_s10 = inlined_call_operand.vmem [shape: bf16[4,8,16,128], index: 10, kind: input, shape index: {}]   ;;  %s4589_s11 = inlined_call_operand.vmem [shape: f32[4,8,1,16], index: 11, kind: input, shape index: {}]   ;;  %s4590_s12 = inlined_call_operand.hbm [shape: bf16[4,8,16,128], index: 12, kind: input, shape index: {}]   ;;  %s4591_s13 = inlined_call_operand.vmem [shape: f32[4,8,1,16], index: 13, kind: input, shape index: {}]   ;;  %s4592_s14 = inlined_call_operand.hbm [shape: bf16[4,8,16,128], index: 14, kind: input, shape index: {}]   ;;  %s4593_s15 = inlined_call_operand.vmem [shape: f32[4,8,1,16], index: 15, kind: input, shape index: {}]   ;;  %s4594_s16 = inlined_call_operand.hbm [shape: bf16[4,8,16,128], index: 16, kind: input, shape index: {}]   ;;  %s4595_s17 = inlined_call_operand.vmem [shape: f32[4,1,128], index: 17, kind: input, shape index: {}]   ;;  %s4596_s18 = inlined_call_operand.vmem [shape: f32[4,1,128], index: 18, kind: input, shape index: {}]   ;;  %s4597_s19 = inlined_call_operand.vmem [shape: f32[4,1,128], index: 19, kind: input, shape index: {}]   ;;  %s4598_s20 = inlined_call_operand.hbm [shape: bf16[4,128,128], index: 20, kind: input, shape index: {}]   ;;  %s4599_s21 = inlined_call_operand.vmem [shape: f32[4,1,128], index: 21, kind: input, shape index: {}]   ;;  %s4600_s22 = inlined_call_operand.hbm [shape: bf16[4,128,128], index: 22, kind: input, shape index: {}]   ;;  %s4601_s23 = inlined_call_operand.vmem [shape: f32[4,1,128], index: 23, kind: input, shape index: {}]   ;;  %s4602_s24 = inlined_call_operand.hbm [shape: f32[4,1,128], index: 24, kind: input, shape index: {}]   ;;  %s4603_s25 = inlined_call_operand.hbm [shape: f32[4,1,128], index: 25, kind: input, shape index: {}]   ;;  %s4604_s26 = inlined_call_operand.vmem [shape: f32[2,1,128], index: 26, kind: output, shape index: {0}]   ;;  %s4605_s27 = inlined_call_operand.vmem [shape: f32[2,1,128], index: 27, kind: output, shape index: {1}]  }
   0x1   :  { %4610 = sst [smem:[#allocation29_spill]] %s4578_s0 }
   0x2   :  { %4611 = sst [smem:[#allocation30_spill]] %s4579_s1 }
   0x3   :  { %4612 = sst [smem:[#allocation31_spill]] %s4580_s2 }
   0x4   :  { %4613 = sst [smem:[#allocation32_spill]] %s4581_s3 }
   0x5   :  { %4614 = sst [smem:[#allocation33_spill]] %s4582_s4 }
   0x6   :  { %4615 = sst [smem:[#allocation34_spill]] %s4583_s5 }
   0x7   :  { %4616 = sst [smem:[#allocation35_spill]] %s4584_s6 }
   0x8   :  { %4617 = sst [smem:[#allocation36_spill]] %s4585_s7 }
   0x9   :  { %4618 = sst [smem:[#allocation37_spill]] %s4586_s8 }
   0xa   :  { %4619 = sst [smem:[#allocation38_spill]] %s4587_s9 }
   0xb   :  { %4620 = sst [smem:[#allocation39_spill]] %s4588_s10 }
   0xc   :  { %4621 = sst [smem:[#allocation40_spill]] %s4589_s11 }
   0xd   :  { %4622 = sst [smem:[#allocation41_spill]] %s4590_s12 }
   0xe   :  { %4623 = sst [smem:[#allocation42_spill]] %s4594_s16 }
   0xf   :  { %4624 = sst [smem:[#allocation43_spill]] %s4599_s21 }
  0x10   :  { %4625 = sst [smem:[#allocation44_spill]] %s4600_s22 }
  0x11   :  { %4626 = sst [smem:[#allocation45_spill]] %s4601_s23 }
  0x12   :  { %33 = vsyncpa [#allocation3], 0 }
  0x13   :  { %34 = vsyncpa [#allocation5], 0 }
  0x14   :  { %35 = vsyncpa [#allocation8], 0 }
  0x15   :  { %36 = vsyncpa [#allocation11], 0 }
  0x16   :  { %37 = vsyncpa [#allocation14], 0 }
  0x17   :  { %38 = vsyncpa [#allocation17], 0 }
  0x18   :  { %39 = vsyncpa [#allocation20], 0  ;;  %s4143_s7 = smov 0  }
  0x19 LB: > { %4627 = sst [smem:[#allocation28_spill]] %s3974_s7  ;;  %s4152_s5 = sadd.s32 4294967295, %s3974_s7   ;;  %s3974_s7 = sphi %s4143_s7, %s45_s7  }
  0x1a   : > { %s4628_s30 = sld [smem:[#allocation33_spill]]  ;;  %p3017_p0 = scmp.ge.s32.totalorder %s3974_s7, 1 }
  0x1b   : > { %p658_p1 = scmp.lt.s32.totalorder %s3974_s7, 3  ;;  %p3413_p2 = scmp.eq.s32.totalorder %s4152_s5, 0 }
  0x1c   : > { %s3984_s0 = smov [#allocation4]   ;;  %s4630_s6 = sld [smem:[#allocation36_spill]] }
  0x1d   : > { %p4157_p3 = pnand %p3017_p0, %p658_p1  ;;  %s687_s10 = sshll.u32 %s3984_s0, 4  ;;  %s688_s10 = int_to_ptr.vmem [resolvable:$true] %s687_s10 }
  0x1e   : > { %s4631_s12 = sld [smem:[#allocation41_spill]]  ;;  %s3986_s29 = smov [#allocation10]  }
  0x1f   : > { %p3376_p4 = pneg %p4157_p3  ;;  %s746_s1 = sshll.u32 %s3986_s29, 4  ;;  %s747_s1 = int_to_ptr.vmem [resolvable:$true] %s746_s1 }
  0x20   : > { %s685_s9 = sshll.u32 %s4628_s30, 4  ;;  %s3985_s30 = smov [#allocation7]   ;;  %s686_s9 = int_to_ptr.hbm [resolvable:$true] %s685_s9 }
  0x21   : > { %p4171_p5 = pnand %p3413_p2, %p3376_p4  ;;  %s714_s0 = sshll.u32 %s3985_s30, 4  ;;  %s715_s0 = int_to_ptr.vmem [resolvable:$true] %s714_s0 }
  0x22   : > { %s712_s11 = sshll.u32 %s4630_s6, 4  ;;  %s3987_s6 = smov 64   ;;  %s713_s11 = int_to_ptr.hbm [resolvable:$true] %s712_s11 }
  0x23   : > { %3382 = dma.hbm_to_vmem [thread:$0]  (!%p4171_p5), %s686_s9, 16, %s688_s10, [#allocation5]  }
  0x24   : > { %s744_s4 = sshll.u32 %s4631_s12, 4  ;;  %s3988_s2 = smov 4   ;;  %s745_s4 = int_to_ptr.hbm [resolvable:$true] %s744_s4 }
  0x25   : > { %3388 = dma.hbm_to_vmem [thread:$0]  (!%p4171_p5), %s713_s11, 16, %s715_s0, [#allocation8]  }
  0x26   : > { %3394 = dma.hbm_to_vmem [thread:$0]  (!%p4171_p5), %s745_s4, 4096, %s747_s1, [#allocation11], %s3987_s6, %s3987_s6, %s3988_s2  }
  0x27   : > { %s4633_s16 = sld [smem:[#allocation42_spill]]  ;;  %s3989_s7 = smov [#allocation13]  }
  0x28   : > { %s780_s9 = sshll.u32 %s3989_s7, 4  ;;  %s4634_s22 = sld [smem:[#allocation44_spill]]  ;;  %s781_s9 = int_to_ptr.vmem [resolvable:$true] %s780_s9 }
  0x29   : > { %s3990_s4 = smov [#allocation16]   ;;  %s4635_s30 = sld [smem:[#allocation32_spill]] }
  0x2a   : > { %s820_s29 = sshll.u32 %s3990_s4, 4  ;;  %s4636_s11 = sld [smem:[#allocation34_spill]]  ;;  %s821_s29 = int_to_ptr.vmem [resolvable:$true] %s820_s29 }
  0x2b   : > { %s3992_s4 = smov [#allocation6]   ;;  %s4637_s23 = sld [smem:[#allocation37_spill]] }
  0x2c   : > { %s699_s1 = sshll.u32 %s3992_s4, 4  ;;  %s761_s7 = sshll.u32 %s4592_s14, 4  ;;  %s700_s1 = int_to_ptr.vmem [resolvable:$true] %s699_s1  ;;  %s762_s7 = int_to_ptr.hbm [resolvable:$true] %s761_s7 }
  0x2d   : > { %s778_s12 = sshll.u32 %s4633_s16, 4  ;;  %s3993_s10 = smov [#allocation9]   ;;  %s779_s12 = int_to_ptr.hbm [resolvable:$true] %s778_s12 }
  0x2e   : > { %s818_s0 = sshll.u32 %s4634_s22, 4  ;;  %s835_s3 = sshll.u32 %s4602_s24, 4  ;;  %s819_s0 = int_to_ptr.hbm [resolvable:$true] %s818_s0  ;;  %s836_s3 = int_to_ptr.hbm [resolvable:$true] %s835_s3 }
  0x2f   : > { %3400 = dma.hbm_to_vmem [thread:$0]  (!%p4171_p5), %s779_s12, 4096, %s781_s9, [#allocation14], %s3987_s6, %s3987_s6, %s3988_s2  }
  0x30   : > { %s673_s16 = sshll.u32 %s4635_s30, 4  ;;  %s697_s22 = sshll.u32 %s4636_s11, 4  ;;  %s674_s16 = int_to_ptr.hbm [resolvable:$true] %s673_s16  ;;  %s698_s22 = int_to_ptr.hbm [resolvable:$true] %s697_s22 }
  0x31   : > { %3406 = dma.hbm_to_vmem [thread:$0]  (!%p4171_p5), %s819_s0, 4096, %s821_s29, [#allocation17], %s3987_s6, %s3987_s6, %s3988_s2  }
  0x32   : > { %s3991_s12 = smov [#allocation2]   ;;  %s724_s21 = sshll.u32 %s4637_s23, 4  ;;  %s725_s21 = int_to_ptr.hbm [resolvable:$true] %s724_s21 }
  0x33   : > { %s675_s9 = sshll.u32 %s3991_s12, 4  ;;  %s726_s11 = sshll.u32 %s3993_s10, 4  ;;  %s676_s9 = int_to_ptr.vmem [resolvable:$true] %s675_s9  ;;  %s727_s11 = int_to_ptr.vmem [resolvable:$true] %s726_s11 }
  0x34   : > { %3379 = dma.hbm_to_vmem [thread:$0]  (!%p4171_p5), %s674_s16, 16, %s676_s9, [#allocation3]  }
  0x35   : > { %3385 = dma.hbm_to_vmem [thread:$0]  (!%p4171_p5), %s698_s22, 16, %s700_s1, [#allocation5]  }
  0x36   : > { %3391 = dma.hbm_to_vmem [thread:$0]  (!%p4171_p5), %s725_s21, 16, %s727_s11, [#allocation8]  }
  0x37   : > { %s3994_s16 = smov [#allocation12]   ;;  %s801_s23 = sshll.u32 %s4598_s20, 4  ;;  %s802_s23 = int_to_ptr.hbm [resolvable:$true] %s801_s23 }
  0x38   : > { %s763_s12 = sshll.u32 %s3994_s16, 4  ;;  %s3995_s30 = smov [#allocation15]   ;;  %s764_s12 = int_to_ptr.vmem [resolvable:$true] %s763_s12 }
  0x39   : > { %3397 = dma.hbm_to_vmem [thread:$0]  (!%p4171_p5), %s762_s7, 4096, %s764_s12, [#allocation11], %s3987_s6, %s3987_s6, %s3988_s2  }
  0x3a   : > { %s803_s21 = sshll.u32 %s3995_s30, 4  ;;  %s3996_s0 = smov [#allocation18]   ;;  %s804_s21 = int_to_ptr.vmem [resolvable:$true] %s803_s21 }
  0x3b   : > { %3403 = dma.hbm_to_vmem [thread:$0]  (!%p4171_p5), %s802_s23, 4096, %s804_s21, [#allocation14], %s3987_s6, %s3987_s6, %s3988_s2  }
  0x3c   : > { %s837_s29 = sshll.u32 %s3996_s0, 4  ;;  %s3997_s10 = smov 16   ;;  %s838_s29 = int_to_ptr.vmem [resolvable:$true] %s837_s29 }
  0x3d   : > { %s3998_s11 = smov 1   ;;  %s849_s12 = sshll.u32 %s4603_s25, 4  ;;  %s850_s12 = int_to_ptr.hbm [resolvable:$true] %s849_s12 }
  0x3e   : > { %3409 = dma.hbm_to_vmem [thread:$0]  (!%p4171_p5), %s836_s3, 64, %s838_s29, [#allocation17], %s3997_s10, %s3997_s10, %s3998_s11  }
  0x3f   : > { %s3999_s9 = smov [#allocation19]   ;;  %880 = sbr.rel (%p4157_p3) target bundleno = 2704 (0xa90), region = 124 }
  0x40   : > { %s851_s4 = sshll.u32 %s3999_s9, 4  ;;  %s852_s4 = int_to_ptr.vmem [resolvable:$true] %s851_s4 }
  0x41   : > { %3412 = dma.hbm_to_vmem [thread:$0]  (!%p4171_p5), %s850_s12, 64, %s852_s4, [#allocation20], %s3997_s10, %s3997_s10, %s3998_s11  }
  0x44   : > { %3945 = dma.done.wait (%p3413_p2), [#allocation3], 16  }
  0x45   : > { %3947 = vsyncadd (%p3413_p2), [#allocation3], 4294967280 }
  0x46   : > { %3949 = dma.done.wait (%p3413_p2), [#allocation5], 32  }
  0x47   : > { %3951 = vsyncadd (%p3413_p2), [#allocation5], 4294967264 }
  0x48   : > { %3953 = dma.done.wait (%p3413_p2), [#allocation8], 32  }
  0x49   : > { %3955 = vsyncadd (%p3413_p2), [#allocation8], 4294967264 }
  0x4a   : > { %3957 = dma.done.wait (%p3413_p2), [#allocation11], 8192  }
  0x4b   : > { %3959 = vsyncadd (%p3413_p2), [#allocation11], 4294959104 }
  0x4c   : > { %3961 = dma.done.wait (%p3413_p2), [#allocation14], 8192  }
  0x4d   : > { %3963 = vsyncadd (%p3413_p2), [#allocation14], 4294959104 }
  0x4e   : > { %3965 = dma.done.wait (%p3413_p2), [#allocation17], 4160  }
  0x4f   : > { %3967 = vsyncadd (%p3413_p2), [#allocation17], 4294963136 }
  0x50   : > { %3969 = dma.done.wait (%p3413_p2), [#allocation20], 64  }
  0x51   : > { %3971 = vsyncadd (%p3413_p2), [#allocation20], 4294967232  ;;  %p1011_p6 = scmp.lt.s32.totalorder %s4152_s5, 1  ;;  %vm1037_vm0 = vcmask 1043456   ;;  %s4638_s2 = sld [smem:[#allocation30_spill]]  ;;  %vm1033_vm1 = vcmask 162816  }
  0x52   : > { %s4639_s11 = sld [smem:[#allocation31_spill]]  ;;  %v3480_v5 = vld [vmem:[#allocation2] ss:$0 sm:$0xff]  ;;  %vm1063_vm2 = vcmask 130048   ;;  %v4000_v9 = vmov 16.0   ;;  %s4319_s7 = smov 0  }
  0x53   : > { %s4650_s5 = smov (!%p1011_p6, %s4152_s5), 1  ;;  %s4640_s4 = sld [smem:[#allocation29_spill]]  ;;  %3485 = vrcp.f32 %v4000_v9  ;;  %v3481_v38 = vld [vmem:[#allocation4] ss:$0 sm:$0xff]  ;;  %v3482_v45 = vld [vmem:[#allocation6] ss:$0 sm:$0xff] }
  0x54   : > { %s3044_s28 = sshll.u32 %s4650_s5, 3  ;;  %s1020_s3 = scalar_lea.vmem %s4604_s26, %s4650_s5 }
  0x55   : > { %s1023_s0 = scalar_lea.vmem %s4605_s27, %s4650_s5  ;;  %s4641_s22 = sld [smem:[#allocation35_spill]] }
  0x56   : > { %s4642_s21 = sld [smem:[#allocation38_spill]] }
  0x57   : > { %s1017_s23 = scalar_lea.vmem %s4638_s2, %s4650_s5 }
  0x58   : > { %v1028_v0 = vld [vmem:[%s4639_s11 + $0x10] sm:$0xf]  ;;  %v1027_v1 = vld [vmem:[%s4639_s11 + $0x8] sm:$0xff]  ;;  %v4298_v2 = vld [vmem:[%s1017_s23] sm:$0x1] }
  0x59   : > { %s1014_s8 = scalar_lea.vmem %s4640_s4, %s3044_s28  ;;  %3045 = vmatpush.msk.msra.mxu0 %vm1037_vm0, %v1028_v0  ;;  %v1026_v3 = vld [vmem:[%s4639_s11] sm:$0xff]  ;;  %v3486_v10 = vpop.eup %3485 }
  0x5a   : > { %v1025_v4 = vld [vmem:[%s1014_s8] sm:$0xff]  ;;  %v1068_v11 = vmul.f32 16.0, %v3486_v10  ;;  %vm1072_vm3 = vweird.f32 %v3486_v10 }
  0x5b   : > { %1055 = vmatpush.msra.mxu0 %v1027_v1  ;;  %v1117_v48 = vld [vmem:[%s4641_s22] sm:$0xff] }
  0x5c   : > { %v1069_v12 = vsub.f32 1.0, %v1068_v11  ;;  %v1168_v57 = vld [vmem:[%s4642_s21 + $0x8] sm:$0xff]  ;;  %v1167_v58 = vld [vmem:[%s4642_s21] sm:$0xff] }
  0x5d   : > { %1056 = vmatpush.msra.mxu0 %v1026_v3  ;;  %1186 = vmatpush.msra.mxu1 %v1168_v57 }
  0x5e   : > { %3046 = vmatmul.msk.f32.vlgmr.msra.gmra.mxu0 %vm1033_vm1, %v1025_v4  ;;  %v1070_v13 = vmul.f32 %v3486_v10, %v1069_v12 }
  0x5f   : > { %1187 = vmatpush.msra.mxu1 %v1167_v58 }
  0x60   : > { %v1071_v14 = vadd.f32 %v3486_v10, %v1070_v13  ;;  %v3483_v13 = vld [vmem:[#allocation7] ss:$0 sm:$0xff] }
  0x62   : > { %v1073_v15 = vsel %vm1072_vm3, %v3486_v10, %v1071_v14 }
  0xdb   : > { %v1058_v6 = vpop.f32.mrf.mxu0 }
  0xdc   : > { %v1059_v7 = vadd.f32 %v3480_v5, %v1058_v6 }
  0xde   : > { %v1064_v8 = vsel %vm1063_vm2, %v1059_v7, 0.0 }
  0xdf   : > { %1065 = vadd.xlane.f32.xlu0 %v1064_v8 }
 0x152   : > { %v1066_v16 = vpop.xlane.xlu0 %1065 }
 0x153   : > { %v1074_v17 = vmul.f32 %v1073_v15, %v1066_v16 }
 0x155   : > { %v1075_v18 = vsub.f32 %v1059_v7, %v1074_v17 }
 0x157   : > { %v1076_v19 = vmul.f32 %v1075_v18, %v1075_v18  ;;  %v1096_v43 = vmul.f32 %v3481_v38, %v1075_v18 }
 0x159   : > { %v1077_v20 = vsel %vm1063_vm2, %v1076_v19, 0.0 }
 0x15a   : > { %1078 = vadd.xlane.f32.xlu0 %v1077_v20  ;;  %v3484_v20 = vld [vmem:[#allocation9] ss:$0 sm:$0xff] }
 0x1cd   : > { %v1079_v21 = vpop.xlane.xlu0 %1078 }
 0x1ce   : > { %v1080_v22 = vmul.f32 0.06666667, %v1079_v21 }
 0x1d0   : > { %3487 = vrsqrt.f32 %v1080_v22  ;;  %vm1088_vm4 = vcmp.eq.f32.partialorder %v1080_v22, inf  ;;  %v1091_v30 = vand.u32 2147483648, %v1080_v22  ;;  %vm1090_vm5 = vcmp.eq.f32.partialorder %v1080_v22, 0.0 }
 0x1d6   : > { %v3488_v23 = vpop.eup %3487 }
 0x1d7   : > { %v1082_v24 = vmul.f32 %v3488_v23, %v1080_v22 }
 0x1d9   : > { %v1083_v25 = vmul.f32 %v3488_v23, %v1082_v24 }
 0x1db   : > { %v1084_v26 = vmul.f32 0.5, %v1083_v25 }
 0x1dd   : > { %v1085_v27 = vsub.f32 1.5, %v1084_v26 }
 0x1df   : > { %v1086_v28 = vmul.f32 %v3488_v23, %v1085_v27 }
 0x1e1   : > { %v1087_v29 = vmul.f32 %v1086_v28, %v1080_v22 }
 0x1e3   : > { %v1089_v31 = vsel %vm1088_vm4, %v1080_v22, %v1087_v29 }
 0x1e4   : > { %v1092_v32 = vsel %vm1090_vm5, %v1091_v30, %v1089_v31 }
 0x1e5   : > { %v1097_v33 = vadd.f32 1e-06, %v1092_v32 }
 0x1e7   : > { %3489 = vrcp.f32 %v1097_v33  ;;  %v1109_v37 = vand.u32 2147483648, %v1097_v33  ;;  %v1107_v40 = vand.u32 2147483647, %v1097_v33  ;;  %vm1103_vm7 = vweird.f32 %v1097_v33 }
 0x1e9   : > { %v1110_v42 = vor.u32 1.1754944e-38, %v1109_v37  ;;  %vm1108_vm9 = vcmp.eq.f32.partialorder %v1107_v40, 8.507059e+37 }
 0x1ed   : > { %v3490_v34 = vpop.eup %3489 }
 0x1ee   : > { %v1099_v35 = vmul.f32 %v3490_v34, %v1097_v33  ;;  %vm1104_vm6 = vweird.f32 %v3490_v34 }
 0x1ef   : > { %vm1105_vm8 = vmor %vm1103_vm7, %vm1104_vm6 }
 0x1f0   : > { %v1100_v36 = vsub.f32 1.0, %v1099_v35 }
 0x1f2   : > { %v1101_v39 = vmul.f32 %v3490_v34, %v1100_v36 }
 0x1f4   : > { %v1102_v41 = vadd.f32 %v3490_v34, %v1101_v39 }
 0x1f6   : > { %v1106_v44 = vsel %vm1105_vm8, %v3490_v34, %v1102_v41 }
 0x1f7   : > { %v1111_v46 = vsel %vm1108_vm9, %v1110_v42, %v1106_v44 }
 0x1f8   : > { %v1112_v47 = vmul.f32 %v1111_v46, %v1096_v43 }
 0x1fa   : > { %v1116_v49 = vadd.f32 %v3482_v45, %v1112_v47 }
 0x1fc   : > { %v1118_v50 = vadd.f32 %v1117_v48, %v1116_v49 }
 0x1fe   : > { %v1121_v51 = vsel %vm1063_vm2, %v1118_v50, 0.0 }
 0x1ff   : > { %1122 = vadd.xlane.f32.xlu1 %v1121_v51 }
 0x272   : > { %v1123_v52 = vpop.xlane.xlu1 %1122 }
 0x273   : > { %v1124_v53 = vmul.f32 %v1123_v52, %v1073_v15 }
 0x275   : > { %v1125_v54 = vsub.f32 %v1118_v50, %v1124_v53 }
 0x277   : > { %v1126_v55 = vmul.f32 %v1125_v54, %v1125_v54  ;;  %v1146_v18 = vmul.f32 %v3483_v13, %v1125_v54 }
 0x279   : > { %v1127_v56 = vsel %vm1063_vm2, %v1126_v55, 0.0 }
 0x27a   : > { %1128 = vadd.xlane.f32.xlu1 %v1127_v56 }
 0x2ed   : > { %v1129_v59 = vpop.xlane.xlu1 %1128 }
 0x2ee   : > { %v1130_v60 = vmul.f32 0.06666667, %v1129_v59 }
 0x2f0   : > { %3491 = vrsqrt.f32 %v1130_v60  ;;  %vm1138_vm10 = vcmp.eq.f32.partialorder %v1130_v60, inf  ;;  %v1141_v5 = vand.u32 2147483648, %v1130_v60  ;;  %vm1140_vm11 = vcmp.eq.f32.partialorder %v1130_v60, 0.0 }
 0x2f6   : > { %v3492_v61 = vpop.eup %3491 }
 0x2f7   : > { %v1132_v62 = vmul.f32 %v3492_v61, %v1130_v60 }
 0x2f9   : > { %v1133_v63 = vmul.f32 %v3492_v61, %v1132_v62 }
 0x2fb   : > { %v1134_v0 = vmul.f32 0.5, %v1133_v63 }
 0x2fd   : > { %v1135_v1 = vsub.f32 1.5, %v1134_v0 }
 0x2ff   : > { %v1136_v3 = vmul.f32 %v3492_v61, %v1135_v1 }
 0x301   : > { %v1137_v4 = vmul.f32 %v1136_v3, %v1130_v60 }
 0x303   : > { %v1139_v6 = vsel %vm1138_vm10, %v1130_v60, %v1137_v4 }
 0x304   : > { %v1142_v7 = vsel %vm1140_vm11, %v1141_v5, %v1139_v6 }
 0x305   : > { %v1147_v8 = vadd.f32 1e-06, %v1142_v7 }
 0x307   : > { %3493 = vrcp.f32 %v1147_v8  ;;  %v1159_v12 = vand.u32 2147483648, %v1147_v8  ;;  %v1157_v15 = vand.u32 2147483647, %v1147_v8  ;;  %vm1153_vm13 = vweird.f32 %v1147_v8 }
 0x309   : > { %v1160_v17 = vor.u32 1.1754944e-38, %v1159_v12  ;;  %vm1158_vm15 = vcmp.eq.f32.partialorder %v1157_v15, 8.507059e+37 }
 0x30d   : > { %v3494_v9 = vpop.eup %3493 }
 0x30e   : > { %v1149_v10 = vmul.f32 %v3494_v9, %v1147_v8  ;;  %vm1154_vm12 = vweird.f32 %v3494_v9 }
 0x30f   : > { %vm1155_vm14 = vmor %vm1153_vm13, %vm1154_vm12 }
 0x310   : > { %v1150_v11 = vsub.f32 1.0, %v1149_v10 }
 0x312   : > { %v1151_v14 = vmul.f32 %v3494_v9, %v1150_v11 }
 0x314   : > { %v1152_v16 = vadd.f32 %v3494_v9, %v1151_v14 }
 0x316   : > { %v1156_v19 = vsel %vm1155_vm14, %v3494_v9, %v1152_v16 }
 0x317   : > { %v1161_v21 = vsel %vm1158_vm15, %v1160_v17, %v1156_v19 }
 0x318   : > { %v1162_v22 = vmul.f32 %v1161_v21, %v1146_v18 }
 0x31a   : > { %v1166_v23 = vadd.f32 %v3484_v20, %v1162_v22 }
 0x31c   : > { %3047 = vmatmul.msk.f32.vlgmr.msra.gmra.mxu1 %vm1063_vm2, %v1166_v23 }
 0x399   : > { %v1189_v24 = vpop.f32.mrf.mxu1  }
 0x39a LB: >> { %s4328_s16 = sshll.u32 %s3982_s7, 6  ;;  %s4643_s4 = sld [smem:[#allocation39_spill]]  ;;  %v4350_v33 = vpack.c.bf16 %v3978_v24, %v3978_v24  ;;  %vm1999_vm1 = vcmask 64512   ;;  %s3982_s7 = sphi %s4319_s7, %s1198_s7   ;;  %v3978_v24 = vphi %v1189_v24, %v4647_v24  }
 0x39b   : >> { %s4335_s6 = sshll.u32 %s3982_s7, 3  ;;  %s4338_s2 = scalar_lea.vmem [#allocation10], %s4328_s16 }
 0x39c   : >> { %v3284_v31 = vld [vmem:[%s4338_s2] sm:$0xff]  ;;  %v3285_v32 = vld [vmem:[%s4338_s2 + $0x8] sm:$0xff]  ;;  %s4644_s22 = sld [smem:[#allocation40_spill]]  ;;  %s4362_s10 = scalar_lea.vmem %s4591_s13, %s4335_s6  ;;  %v3286_v38 = vld [vmem:[%s4338_s2 + $0x10] sm:$0xff] }
 0x39d   : >> { %v3289_v36 = vld [vmem:[%s4338_s2 + $0x28] sm:$0xff]  ;;  %v3288_v37 = vld [vmem:[%s4338_s2 + $0x20] sm:$0xff]  ;;  %v3287_v39 = vld [vmem:[%s4338_s2 + $0x18] sm:$0xff]  ;;  %s4375_s12 = scalar_lea.vmem [#allocation12], %s4328_s16  ;;  %s2465_s23 = scalar_lea.vmem %s4595_s17, %s3982_s7 }
 0x39e   : >> { %v3290_v40 = vld [vmem:[%s4338_s2 + $0x30] sm:$0xff]  ;;  %v3291_v41 = vld [vmem:[%s4338_s2 + $0x38] sm:$0xff]  ;;  %v3293_v42 = vld [vmem:[%s4375_s12] sm:$0xff]  ;;  %s2472_s30 = scalar_lea.vmem %s4596_s18, %s3982_s7  ;;  %s2529_s2 = scalar_lea.vmem [#allocation15], %s4328_s16 }
 0x39f   : >> { %v3294_v43 = vld [vmem:[%s4375_s12 + $0x8] sm:$0xff]  ;;  %v3297_v44 = vld [vmem:[%s4375_s12 + $0x20] sm:$0xff]  ;;  %v3295_v46 = vld [vmem:[%s4375_s12 + $0x10] sm:$0xff]  ;;  %s4523_s28 = scalar_lea.vmem [#allocation16], %s4328_s16 }
 0x3a0   : >> { %s1203_s8 = scalar_lea.vmem %s4643_s4, %s4328_s16  ;;  %v3298_v45 = vld [vmem:[%s4375_s12 + $0x28] sm:$0xff]  ;;  %v3296_v47 = vld [vmem:[%s4375_s12 + $0x18] sm:$0xff]  ;;  %v3299_v50 = vld [vmem:[%s4375_s12 + $0x30] sm:$0xff] }
 0x3a1   : >> { %v3275_v25 = vld [vmem:[%s1203_s8] sm:$0xff]  ;;  %v3276_v26 = vld [vmem:[%s1203_s8 + $0x8] sm:$0xff]  ;;  %v3277_v29 = vld [vmem:[%s1203_s8 + $0x10] sm:$0xff] }
 0x3a2   : >> { %v3279_v27 = vld [vmem:[%s1203_s8 + $0x20] sm:$0xff]  ;;  %v3280_v28 = vld [vmem:[%s1203_s8 + $0x28] sm:$0xff]  ;;  %v3278_v30 = vld [vmem:[%s1203_s8 + $0x18] sm:$0xff]  ;;  %1267 = vmatpush.bf16.xpose.msra.mxu2 %v3275_v25  ;;  %1286 = vmatpush.bf16.xpose.msra.mxu3 %v3276_v26  ;;  %s4346_s1 = scalar_lea.vmem %s4644_s22, %s4335_s6 }
 0x3a3   : >> { %1343 = vmatpush.bf16.xpose.msra.mxu0 %v3279_v27  ;;  %1362 = vmatpush.bf16.xpose.msra.mxu1 %v3280_v28  ;;  %v3281_v34 = vld [vmem:[%s1203_s8 + $0x30] sm:$0xff]  ;;  %v3282_v35 = vld [vmem:[%s1203_s8 + $0x38] sm:$0xff]  ;;  %s4391_s8 = scalar_lea.vmem %s4593_s15, %s4335_s6  ;;  %v3499_v58 = vld [vmem:[%s4362_s10] ss:$0 sm:$0xff]  ;;  %s2265_s6 = scalar_lea.vmem [#allocation13], %s4328_s16 }
 0x3a4   : >> { %v3300_v55 = vld [vmem:[%s4375_s12 + $0x38] sm:$0xff]  ;;  %v3500_v59 = vld [vmem:[%s4362_s10 + $0x1] ss:$0 sm:$0xff]  ;;  %v3497_v0 = vld [vmem:[%s4346_s1] ss:$0 sm:$0xff]  ;;  %s2474_s12 = scalar_lea.vmem %s4597_s19, %s3982_s7  ;;  %s2701_s16 = scalar_lea.vmem [#allocation19], %s3982_s7 }
 0x3a5   : >> { %v3498_v1 = vld [vmem:[%s4346_s1 + $0x1] ss:$0 sm:$0xff]  ;;  %v3503_v17 = vld [vmem:[%s4362_s10 + $0x5] ss:$0 sm:$0xff]  ;;  %v3504_v18 = vld [vmem:[%s4362_s10 + $0x4] ss:$0 sm:$0xff] }
 0x3a6   : >> { %v3495_v21 = vld [vmem:[%s4346_s1 + $0x4] ss:$0 sm:$0xff]  ;;  %v3496_v22 = vld [vmem:[%s4346_s1 + $0x5] ss:$0 sm:$0xff] }
 0x3a9   : >> { %1268 = vmatmul.bf16.vlgmr.msra.gmra.mxu2 %v4350_v33  ;;  %1287 = vmatmul.bf16.vlgmr.msra.gmra.mxu3 %v4350_v33 }
 0x3aa   : >> { %1305 = vmatpush.bf16.xpose.msrb.mxu2 %v3277_v29  ;;  %1324 = vmatpush.bf16.xpose.msrb.mxu3 %v3278_v30 }
 0x3ab   : >> { %1470 = vmatpush.bf16.xpose.msrb.mxu0 %v3284_v31  ;;  %1489 = vmatpush.bf16.xpose.msrb.mxu1 %v3285_v32 }
 0x3ac   : >> { %1344 = vmatmul.bf16.vlgmr.msra.gmra.mxu0 %v4350_v33  ;;  %1363 = vmatmul.bf16.vlgmr.msra.gmra.mxu1 %v4350_v33 }
 0x3b2   : >> { %1381 = vmatpush.bf16.xpose.msra.mxu2 %v3281_v34  ;;  %1400 = vmatpush.bf16.xpose.msra.mxu3 %v3282_v35 }
 0x3b3   : >> { %1565 = vmatpush.bf16.xpose.msra.mxu1 %v3289_v36  ;;  %1546 = vmatpush.bf16.xpose.msra.mxu0 %v3288_v37 }
 0x3b9   : >> { %1306 = vmatmul.bf16.vlgmr.msrb.gmra.mxu2 %v4350_v33  ;;  %1325 = vmatmul.bf16.vlgmr.msrb.gmra.mxu3 %v4350_v33 }
 0x3ba   : >> { %1508 = vmatpush.bf16.xpose.msrb.mxu2 %v3286_v38  ;;  %1527 = vmatpush.bf16.xpose.msrb.mxu3 %v3287_v39 }
 0x3bc   : >> { %1471 = vmatmul.bf16.vlgmr.msrb.gmra.mxu0 %v4350_v33  ;;  %1490 = vmatmul.bf16.vlgmr.msrb.gmra.mxu1 %v4350_v33 }
 0x3bd   : >> { %1673 = vmatpush.bf16.xpose.msrb.mxu0 %v3293_v42  ;;  %1692 = vmatpush.bf16.xpose.msrb.mxu1 %v3294_v43  ;;  %v3511_v42 = vld [vmem:[%s4391_s8] ss:$0 sm:$0xff] }
 0x3c9   : >> { %1382 = vmatmul.bf16.vlgmr.msra.gmra.mxu2 %v4350_v33  ;;  %1401 = vmatmul.bf16.vlgmr.msra.gmra.mxu3 %v4350_v33 }
 0x3ca   : >> { %1584 = vmatpush.bf16.xpose.msra.mxu2 %v3290_v40  ;;  %1603 = vmatpush.bf16.xpose.msra.mxu3 %v3291_v41  ;;  %v3507_v40 = vld [vmem:[%s4362_s10 + $0x2] ss:$0 sm:$0xff]  ;;  %v3508_v41 = vld [vmem:[%s4362_s10 + $0x3] ss:$0 sm:$0xff] }
 0x3cc   : >> { %1566 = vmatmul.bf16.vlgmr.msra.gmra.mxu1 %v4350_v33  ;;  %1547 = vmatmul.bf16.vlgmr.msra.gmra.mxu0 %v4350_v33 }
 0x3cd   : >> { %1749 = vmatpush.bf16.xpose.msra.mxu0 %v3297_v44  ;;  %1768 = vmatpush.bf16.xpose.msra.mxu1 %v3298_v45  ;;  %v3512_v44 = vld [vmem:[%s4391_s8 + $0x1] ss:$0 sm:$0xff] }
 0x3d9   : >> { %1509 = vmatmul.bf16.vlgmr.msrb.gmra.mxu2 %v4350_v33  ;;  %1528 = vmatmul.bf16.vlgmr.msrb.gmra.mxu3 %v4350_v33 }
 0x3da   : >> { %1711 = vmatpush.bf16.xpose.msrb.mxu2 %v3295_v46  ;;  %1730 = vmatpush.bf16.xpose.msrb.mxu3 %v3296_v47 }
 0x3dc   : >> { %1674 = vmatmul.bf16.vlgmr.msrb.gmra.mxu0 %v4350_v33  ;;  %1693 = vmatmul.bf16.vlgmr.msrb.gmra.mxu1 %v4350_v33 }
 0x3e9   : >> { %1585 = vmatmul.bf16.vlgmr.msra.gmra.mxu2 %v4350_v33  ;;  %1604 = vmatmul.bf16.vlgmr.msra.gmra.mxu3 %v4350_v33 }
 0x3ea   : >> { %1787 = vmatpush.bf16.xpose.msra.mxu2 %v3299_v50  ;;  %1806 = vmatpush.bf16.xpose.msra.mxu3 %v3300_v55  ;;  %v3502_v55 = vld [vmem:[%s4346_s1 + $0x3] ss:$0 sm:$0xff] }
 0x3ec   : >> { %1750 = vmatmul.bf16.vlgmr.msra.gmra.mxu0 %v4350_v33  ;;  %1769 = vmatmul.bf16.vlgmr.msra.gmra.mxu1 %v4350_v33 }
 0x3f9   : >> { %1712 = vmatmul.bf16.vlgmr.msrb.gmra.mxu2 %v4350_v33  ;;  %1731 = vmatmul.bf16.vlgmr.msrb.gmra.mxu3 %v4350_v33 }
 0x409   : >> { %1788 = vmatmul.bf16.vlgmr.msra.gmra.mxu2 %v4350_v33  ;;  %1807 = vmatmul.bf16.vlgmr.msra.gmra.mxu3 %v4350_v33 }
 0x429   : >> { %v1345_v48 = vpop.f32.mrf.mxu0  ;;  %v1364_v49 = vpop.f32.mrf.mxu1 }
 0x42a   : >> { %v1346_v28 = vadd.f32 %v3495_v21, %v1345_v48  ;;  %v1365_v29 = vadd.f32 %v3496_v22, %v1364_v49 }
 0x42c   : >> { %v1269_v51 = vpop.f32.mrf.mxu2  ;;  %v1288_v52 = vpop.f32.mrf.mxu3  ;;  %v1816_v36 = vpack.c.bf16 %v1346_v28, %v1346_v28  ;;  %v1817_v37 = vpack.c.bf16 %v1365_v29, %v1365_v29 }
 0x42d   : >> { %v1270_v9 = vadd.f32 %v3497_v0, %v1269_v51  ;;  %v1289_v10 = vadd.f32 %v3498_v1, %v1288_v52 }
 0x42f   : >> { %v1812_v13 = vpack.c.bf16 %v1270_v9, %v1270_v9  ;;  %v1813_v14 = vpack.c.bf16 %v1289_v10, %v1289_v10  ;;  %v3509_v9 = vld [vmem:[%s4362_s10 + $0x6] ss:$0 sm:$0xff]  ;;  %v3510_v10 = vld [vmem:[%s4362_s10 + $0x7] ss:$0 sm:$0xff]  ;;  %s4646_s10 = sld [smem:[#allocation45_spill]] }
 0x431   : >> { %v1347_v53 = vpop.f32.mrf.mxu0  ;;  %v1366_v54 = vpop.f32.mrf.mxu1 }
 0x432   : >> { %v3501_v54 = vld [vmem:[%s4346_s1 + $0x2] ss:$0 sm:$0xff] }
 0x434   : >> { %v1271_v56 = vpop.f32.mrf.mxu2  ;;  %v1290_v57 = vpop.f32.mrf.mxu3 }
 0x435   : >> { %s2632_s9 = scalar_lea.vmem %s4646_s10, %s3982_s7 }
 0x439   : >> { %v1472_v60 = vpop.f32.mrf.mxu0  ;;  %v1491_v61 = vpop.f32.mrf.mxu1 }
 0x43a   : >> { %v1473_v62 = vadd.f32 %v3499_v58, %v1472_v60  ;;  %v1492_v63 = vadd.f32 %v3500_v59, %v1491_v61 }
 0x43c   : >> { %v1820_v3 = vpack.c.bf16 %v1473_v62, %v1473_v62  ;;  %v1821_v4 = vpack.c.bf16 %v1492_v63, %v1492_v63  ;;  %v4411_v7 = vpop.f32.mrf.mxu2  ;;  %v4413_v8 = vpop.f32.mrf.mxu3 }
 0x43d   : >> { %v1308_v0 = vadd.f32 %v3501_v54, %v4411_v7  ;;  %v1327_v1 = vadd.f32 %v3502_v55, %v4413_v8 }
 0x43e   : >> { %v1832_v5 = vsel %vm1063_vm2, %v1820_v3, 0  ;;  %v1851_v6 = vsel %vm1063_vm2, %v1821_v4, 0 }
 0x43f   : >> { %1841 = vmatpush.bf16.xpose.msrb.mxu0 %v1832_v5  ;;  %1860 = vmatpush.bf16.xpose.msrb.mxu1 %v1851_v6  ;;  %v1814_v5 = vpack.c.bf16 %v1308_v0, %v1308_v0  ;;  %v1815_v6 = vpack.c.bf16 %v1327_v1, %v1327_v1 }
 0x441   : >> { %v1493_v11 = vpop.f32.mrf.mxu1  ;;  %v1474_v12 = vpop.f32.mrf.mxu0 }
 0x444   : >> { %v1309_v15 = vpop.f32.mrf.mxu2  ;;  %v1328_v16 = vpop.f32.mrf.mxu3 }
 0x445   : >> { %v3505_v15 = vld [vmem:[%s4346_s1 + $0x6] ss:$0 sm:$0xff]  ;;  %v3506_v16 = vld [vmem:[%s4346_s1 + $0x7] ss:$0 sm:$0xff] }
 0x446   : >> { %3149 = vmatmul.msk.bf16.vlgmr.msrb.gmra.mxu0 %vm1063_vm2, %v1812_v13  ;;  %3150 = vmatmul.msk.bf16.vlgmr.msrb.gmra.mxu1 %vm1063_vm2, %v1813_v14 }
 0x449   : >> { %v1567_v19 = vpop.f32.mrf.mxu1  ;;  %v1548_v20 = vpop.f32.mrf.mxu0 }
 0x44a   : >> { %v1568_v23 = vadd.f32 %v3503_v17, %v1567_v19  ;;  %v1549_v25 = vadd.f32 %v3504_v18, %v1548_v20 }
 0x44c   : >> { %v1825_v26 = vpack.c.bf16 %v1568_v23, %v1568_v23  ;;  %v1824_v27 = vpack.c.bf16 %v1549_v25, %v1549_v25  ;;  %v1383_v32 = vpop.f32.mrf.mxu2  ;;  %v1402_v33 = vpop.f32.mrf.mxu3 }
 0x44d   : >> { %v1384_v19 = vadd.f32 %v3505_v15, %v1383_v32  ;;  %v1403_v20 = vadd.f32 %v3506_v16, %v1402_v33 }
 0x44e   : >> { %v1927_v30 = vsel %vm1063_vm2, %v1825_v26, 0  ;;  %v1908_v31 = vsel %vm1063_vm2, %v1824_v27, 0  ;;  %v3513_v26 = vld [vmem:[%s4391_s8 + $0x4] ss:$0 sm:$0xff]  ;;  %v3514_v27 = vld [vmem:[%s4391_s8 + $0x5] ss:$0 sm:$0xff] }
 0x44f   : >> { %1936 = vmatpush.bf16.xpose.msra.mxu1 %v1927_v30  ;;  %1917 = vmatpush.bf16.xpose.msra.mxu0 %v1908_v31  ;;  %v1818_v23 = vpack.c.bf16 %v1384_v19, %v1384_v19  ;;  %v1819_v25 = vpack.c.bf16 %v1403_v20, %v1403_v20 }
 0x451   : >> { %v1550_v34 = vpop.f32.mrf.mxu0  ;;  %v1569_v35 = vpop.f32.mrf.mxu1 }
 0x454   : >> { %v1385_v38 = vpop.f32.mrf.mxu2  ;;  %v1404_v39 = vpop.f32.mrf.mxu3 }
 0x455   : >> { %v3515_v39 = vld [vmem:[%s4391_s8 + $0x2] ss:$0 sm:$0xff] }
 0x456   : >> { %3154 = vmatmul.msk.bf16.vlgmr.msra.gmra.mxu1 %vm1063_vm2, %v1817_v37  ;;  %3153 = vmatmul.msk.bf16.vlgmr.msra.gmra.mxu0 %vm1063_vm2, %v1816_v36 }
 0x459   : >> { %v1675_v43 = vpop.f32.mrf.mxu0  ;;  %v1694_v45 = vpop.f32.mrf.mxu1 }
 0x45a   : >> { %v1676_v46 = vadd.f32 %v3511_v42, %v1675_v43  ;;  %v1695_v47 = vadd.f32 %v3512_v44, %v1694_v45 }
 0x45c   : >> { %v1510_v48 = vpop.f32.mrf.mxu2  ;;  %v1529_v49 = vpop.f32.mrf.mxu3  ;;  %v2096_v52 = vpack.c.bf16 %v1676_v46, %v1676_v46  ;;  %v2097_v53 = vpack.c.bf16 %v1695_v47, %v1695_v47 }
 0x45d   : >> { %v1511_v50 = vadd.f32 %v3507_v40, %v1510_v48  ;;  %v1530_v51 = vadd.f32 %v3508_v41, %v1529_v49  ;;  %v3516_v40 = vld [vmem:[%s4391_s8 + $0x3] ss:$0 sm:$0xff] }
 0x45e   : >> { %v2108_v58 = vsel %vm1037_vm0, %v2096_v52, 0  ;;  %v2127_v59 = vsel %vm1037_vm0, %v2097_v53, 0  ;;  %v3518_v52 = vld [vmem:[%s4391_s8 + $0x7] ss:$0 sm:$0xff] }
 0x45f   : >> { %v1822_v56 = vpack.c.bf16 %v1511_v50, %v1511_v50  ;;  %v1823_v57 = vpack.c.bf16 %v1530_v51, %v1530_v51  ;;  %2117 = vmatpush.bf16.msrb.mxu0 %v2108_v58  ;;  %2136 = vmatpush.bf16.msrb.mxu1 %v2127_v59  ;;  %v3517_v51 = vld [vmem:[%s4391_s8 + $0x6] ss:$0 sm:$0xff]  ;;  %s4645_s8 = sld [smem:[#allocation43_spill]] }
 0x461   : >> { %v1870_v60 = vsel %vm1063_vm2, %v1822_v56, 0  ;;  %v1889_v61 = vsel %vm1063_vm2, %v1823_v57, 0  ;;  %v1677_v62 = vpop.f32.mrf.mxu0  ;;  %v1696_v63 = vpop.f32.mrf.mxu1 }
 0x462   : >> { %1879 = vmatpush.bf16.xpose.msrb.mxu2 %v1870_v60  ;;  %1898 = vmatpush.bf16.xpose.msrb.mxu3 %v1889_v61  ;;  %v1989_v60 = vperm.slane %v4298_v2, 0 }
 0x464   : >> { %v1512_v3 = vpop.f32.mrf.mxu2  ;;  %v1531_v4 = vpop.f32.mrf.mxu3 }
 0x469   : >> { %3151 = vmatmul.msk.bf16.vlgmr.msrb.gmra.mxu2 %vm1063_vm2, %v1814_v5  ;;  %3152 = vmatmul.msk.bf16.vlgmr.msrb.gmra.mxu3 %vm1063_vm2, %v1815_v6  ;;  %v1751_v28 = vpop.f32.mrf.mxu0  ;;  %v1770_v29 = vpop.f32.mrf.mxu1 }
 0x46a   : >> { %v1752_v30 = vadd.f32 %v3513_v26, %v1751_v28  ;;  %v1771_v31 = vadd.f32 %v3514_v27, %v1770_v29 }
 0x46c   : >> { %v1586_v11 = vpop.f32.mrf.mxu2  ;;  %v1605_v12 = vpop.f32.mrf.mxu3  ;;  %v2100_v34 = vpack.c.bf16 %v1752_v30, %v1752_v30  ;;  %v2101_v35 = vpack.c.bf16 %v1771_v31, %v1771_v31 }
 0x46d   : >> { %v1587_v13 = vadd.f32 %v3509_v9, %v1586_v11  ;;  %v1606_v14 = vadd.f32 %v3510_v10, %v1605_v12 }
 0x46e   : >> { %v2184_v32 = vsel %vm1037_vm0, %v2100_v34, 0  ;;  %v2203_v33 = vsel %vm1037_vm0, %v2101_v35, 0 }
 0x46f   : >> { %v1826_v7 = vpack.c.bf16 %v1587_v13, %v1587_v13  ;;  %v1827_v8 = vpack.c.bf16 %v1606_v14, %v1606_v14  ;;  %2193 = vmatpush.bf16.msra.mxu0 %v2184_v32  ;;  %2212 = vmatpush.bf16.msra.mxu1 %v2203_v33 }
 0x471   : >> { %v1946_v17 = vsel %vm1063_vm2, %v1826_v7, 0  ;;  %v1965_v18 = vsel %vm1063_vm2, %v1827_v8, 0  ;;  %v1753_v36 = vpop.f32.mrf.mxu0  ;;  %v1772_v37 = vpop.f32.mrf.mxu1 }
 0x472   : >> { %1955 = vmatpush.bf16.xpose.msra.mxu2 %v1946_v17  ;;  %1974 = vmatpush.bf16.xpose.msra.mxu3 %v1965_v18 }
 0x474   : >> { %v1588_v21 = vpop.f32.mrf.mxu2  ;;  %v1607_v22 = vpop.f32.mrf.mxu3 }
 0x479   : >> { %3155 = vmatmul.msk.bf16.vlgmr.msra.gmra.mxu2 %vm1063_vm2, %v1818_v23  ;;  %3156 = vmatmul.msk.bf16.vlgmr.msra.gmra.mxu3 %vm1063_vm2, %v1819_v25 }
 0x47c   : >> { %v1713_v38 = vpop.f32.mrf.mxu2  ;;  %v1732_v42 = vpop.f32.mrf.mxu3 }
 0x47d   : >> { %v1714_v41 = vadd.f32 %v3515_v39, %v1713_v38  ;;  %v1733_v43 = vadd.f32 %v3516_v40, %v1732_v42 }
 0x47f   : >> { %v2098_v44 = vpack.c.bf16 %v1714_v41, %v1714_v41  ;;  %v2099_v46 = vpack.c.bf16 %v1733_v43, %v1733_v43 }
 0x481   : >> { %v2146_v47 = vsel %vm1037_vm0, %v2098_v44, 0  ;;  %v2165_v48 = vsel %vm1037_vm0, %v2099_v46, 0 }
 0x482   : >> { %2155 = vmatpush.bf16.msrb.mxu2 %v2146_v47  ;;  %2174 = vmatpush.bf16.msrb.mxu3 %v2165_v48 }
 0x484   : >> { %v1715_v45 = vpop.f32.mrf.mxu2  ;;  %v1734_v49 = vpop.f32.mrf.mxu3 }
 0x48c   : >> { %v1789_v50 = vpop.f32.mrf.mxu2  ;;  %v1808_v55 = vpop.f32.mrf.mxu3 }
 0x48d   : >> { %v1790_v53 = vadd.f32 %v3517_v51, %v1789_v50  ;;  %v1809_v56 = vadd.f32 %v3518_v52, %v1808_v55 }
 0x48f   : >> { %v2102_v54 = vpack.c.bf16 %v1790_v53, %v1790_v53  ;;  %v2103_v59 = vpack.c.bf16 %v1809_v56, %v1809_v56 }
 0x491   : >> { %v2222_v57 = vsel %vm1037_vm0, %v2102_v54, 0  ;;  %v2241_v61 = vsel %vm1037_vm0, %v2103_v59, 0 }
 0x492   : >> { %2231 = vmatpush.bf16.msra.mxu2 %v2222_v57  ;;  %2250 = vmatpush.bf16.msra.mxu3 %v2241_v61 }
 0x494   : >> { %v1791_v58 = vpop.f32.mrf.mxu2  ;;  %v1810_v1 = vpop.f32.mrf.mxu3 }
 0x4c3   : >> { %v1843_v62 = vpop.f32.mrf.mxu0  ;;  %v1862_v63 = vpop.f32.mrf.mxu1 }
 0x4c4   : >> { %v1980_v0 = vmul.f32 0.25, %v1843_v62  ;;  %v1981_v4 = vmul.f32 0.25, %v1862_v63 }
 0x4c6   : >> { %v1991_v3 = vadd.f32 %v1989_v60, %v1980_v0  ;;  %v1992_v10 = vadd.f32 %v1989_v60, %v1981_v4 }
 0x4c8   : >> { %v2000_v5 = vsel %vm1999_vm1, %v1991_v3, -inf  ;;  %v2003_v11 = vsel %vm1999_vm1, %v1992_v10, -inf }
 0x4c9   : >> { %2001 = vmax.xlane.f32.xlu1 %v2000_v5 }
 0x4cb   : >> { %v1845_v6 = vpop.f32.mrf.mxu0  ;;  %v1864_v9 = vpop.f32.mrf.mxu1 }
 0x4d1   : >> { %2004 = vmax.xlane.f32.xlu1 %v2003_v11 }
 0x4d3   : >> { %v1938_v12 = vpop.f32.mrf.mxu1  ;;  %v1919_v13 = vpop.f32.mrf.mxu0 }
 0x4d4   : >> { %v1985_v14 = vmul.f32 0.25, %v1938_v12  ;;  %v1984_v27 = vmul.f32 0.25, %v1919_v13 }
 0x4d6   : >> { %v4462_v15 = vadd.f32 %v1989_v60, %v1985_v14  ;;  %v1995_v34 = vadd.f32 %v1989_v60, %v1984_v27 }
 0x4d8   : >> { %v2015_v16 = vsel %vm1999_vm1, %v4462_v15, -inf  ;;  %v2012_v36 = vsel %vm1999_vm1, %v1995_v34, -inf }
 0x4d9   : >> { %2016 = vmax.xlane.f32.xlu1 %v2015_v16 }
 0x4db   : >> { %v1921_v7 = vpop.f32.mrf.mxu0  ;;  %v1940_v8 = vpop.f32.mrf.mxu1 }
 0x4ec   : >> { %v1881_v17 = vpop.f32.mrf.mxu2  ;;  %v1900_v18 = vpop.f32.mrf.mxu3 }
 0x4ed   : >> { %v1982_v19 = vmul.f32 0.25, %v1881_v17  ;;  %v1983_v21 = vmul.f32 0.25, %v1900_v18 }
 0x4ef   : >> { %v1993_v20 = vadd.f32 %v1989_v60, %v1982_v19  ;;  %v1994_v26 = vadd.f32 %v1989_v60, %v1983_v21 }
 0x4f1   : >> { %v2006_v22 = vsel %vm1999_vm1, %v1993_v20, -inf  ;;  %v2009_v28 = vsel %vm1999_vm1, %v1994_v26, -inf }
 0x4f2   : >> { %2007 = vmax.xlane.f32.xlu0 %v2006_v22 }
 0x4f4   : >> { %v1883_v23 = vpop.f32.mrf.mxu2  ;;  %v1902_v25 = vpop.f32.mrf.mxu3 }
 0x4fa   : >> { %2010 = vmax.xlane.f32.xlu0 %v2009_v28 }
 0x4fc   : >> { %v1957_v29 = vpop.f32.mrf.mxu2  ;;  %v1976_v30 = vpop.f32.mrf.mxu3 }
 0x4fd   : >> { %v1986_v31 = vmul.f32 0.25, %v1957_v29  ;;  %v1987_v32 = vmul.f32 0.25, %v1976_v30 }
 0x4ff   : >> { %v1997_v35 = vadd.f32 %v1989_v60, %v1986_v31  ;;  %v1998_v39 = vadd.f32 %v1989_v60, %v1987_v32 }
 0x501   : >> { %v2018_v33 = vsel %vm1999_vm1, %v1997_v35, -inf  ;;  %v2021_v40 = vsel %vm1999_vm1, %v1998_v39, -inf }
 0x502   : >> { %2019 = vmax.xlane.f32.xlu2 %v2018_v33  ;;  %2013 = vmax.xlane.f32.xlu0 %v2012_v36 }
 0x504   : >> { %v1959_v37 = vpop.f32.mrf.mxu2  ;;  %v1978_v38 = vpop.f32.mrf.mxu3 }
 0x50a   : >> { %2022 = vmax.xlane.f32.xlu2 %v2021_v40 }
 0x53c   : >> { %v2002_v41 = vpop.xlane.xlu1 %2001 }
 0x53d   : >> { %v2024_v42 = vsub.f32 %v1991_v3, %v2002_v41 }
 0x53f   : >> { %v2032_v43 = vmul.f32 1.442695, %v2024_v42 }
 0x541   : >> { %3526 = vpow2.f32 %v2032_v43 }
 0x544   : >> { %v2005_v46 = vpop.xlane.xlu1 %2004 }
 0x545   : >> { %v2025_v49 = vsub.f32 %v1992_v10, %v2005_v46 }
 0x547   : >> { %v3527_v44 = vpop.eup %3526  ;;  %v2034_v51 = vmul.f32 1.442695, %v2025_v49 }
 0x548   : >> { %v2048_v45 = vsel %vm1999_vm1, %v3527_v44, 0.0 }
 0x549   : >> { %2049 = vadd.xlane.f32.xlu1 %v2048_v45 }
 0x54c   : >> { %v2017_v57 = vpop.xlane.xlu1 %2016 }
 0x54d   : >> { %v2029_v0 = vsub.f32 %v4462_v15, %v2017_v57  ;;  %v3305_v57 = vld [vmem:[%s2265_s6 + $0x18] sm:$0xff] }
 0x54f   : >> { %v2042_v6 = vmul.f32 1.442695, %v2029_v0 }
 0x565   : >> { %v2008_v47 = vpop.xlane.xlu0 %2007 }
 0x566   : >> { %v2026_v48 = vsub.f32 %v1993_v20, %v2008_v47 }
 0x568   : >> { %v2036_v50 = vmul.f32 1.442695, %v2026_v48 }
 0x56a   : >> { %3528 = vpow2.f32 %v2036_v50 }
 0x56b   : >> { %3530 = vpow2.f32 %v2034_v51  ;;  %v3302_v51 = vld [vmem:[%s2265_s6] sm:$0xff] }
 0x56d   : >> { %v2011_v52 = vpop.xlane.xlu0 %2010 }
 0x56e   : >> { %v2027_v53 = vsub.f32 %v1994_v26, %v2011_v52 }
 0x570   : >> { %v3529_v54 = vpop.eup %3528  ;;  %v2038_v55 = vmul.f32 1.442695, %v2027_v53 }
 0x571   : >> { %v2054_v56 = vsel %vm1999_vm1, %v3529_v54, 0.0  ;;  %v3531_v60 = vpop.eup %3530 }
 0x572   : >> { %3532 = vpow2.f32 %v2038_v55  ;;  %2055 = vadd.xlane.f32.xlu2 %v2054_v56  ;;  %v2051_v4 = vsel %vm1999_vm1, %v3531_v60, 0.0  ;;  %v3304_v55 = vld [vmem:[%s2265_s6 + $0x10] sm:$0xff]  ;;  %v3303_v56 = vld [vmem:[%s2265_s6 + $0x8] sm:$0xff] }
 0x575   : >> { %v2020_v58 = vpop.xlane.xlu2 %2019  ;;  %v2014_v59 = vpop.xlane.xlu0 %2013 }
 0x576   : >> { %v2030_v61 = vsub.f32 %v1997_v35, %v2020_v58  ;;  %v2028_v62 = vsub.f32 %v1995_v34, %v2014_v59  ;;  %v3306_v58 = vld [vmem:[%s2265_s6 + $0x20] sm:$0xff]  ;;  %v3308_v59 = vld [vmem:[%s2265_s6 + $0x30] sm:$0xff] }
 0x578   : >> { %v3533_v63 = vpop.eup %3532  ;;  %v2044_v1 = vmul.f32 1.442695, %v2030_v61  ;;  %v2040_v3 = vmul.f32 1.442695, %v2028_v62  ;;  %v3309_v61 = vld [vmem:[%s2265_s6 + $0x38] sm:$0xff] }
 0x579   : >> { %v2057_v5 = vsel %vm1999_vm1, %v3533_v63, 0.0 }
 0x57a   : >> { %3534 = vpow2.f32 %v2044_v1  ;;  %2052 = vadd.xlane.f32.xlu2 %v2051_v4  ;;  %2058 = vadd.xlane.f32.xlu0 %v2057_v5 }
 0x57b   : >> { %3536 = vpow2.f32 %v2040_v3 }
 0x57c   : >> { %3538 = vpow2.f32 %v2042_v6 }
 0x57d   : >> { %v2023_v9 = vpop.xlane.xlu2 %2022 }
 0x57e   : >> { %v2031_v10 = vsub.f32 %v1998_v39, %v2023_v9 }
 0x580   : >> { %v3535_v11 = vpop.eup %3534  ;;  %v2046_v12 = vmul.f32 1.442695, %v2031_v10 }
 0x581   : >> { %v3537_v13 = vpop.eup %3536  ;;  %v2066_v14 = vsel %vm1999_vm1, %v3535_v11, 0.0 }
 0x582   : >> { %3540 = vpow2.f32 %v2046_v12  ;;  %2067 = vadd.xlane.f32.xlu0 %v2066_v14  ;;  %v2060_v15 = vsel %vm1999_vm1, %v3537_v13, 0.0  ;;  %v3539_v16 = vpop.eup %3538 }
 0x583   : >> { %2061 = vadd.xlane.f32.xlu2 %v2060_v15  ;;  %v2063_v17 = vsel %vm1999_vm1, %v3539_v16, 0.0 }
 0x588   : >> { %v3541_v7 = vpop.eup %3540 }
 0x589   : >> { %v2069_v8 = vsel %vm1999_vm1, %v3541_v7, 0.0 }
 0x58a   : >> { %2070 = vadd.xlane.f32.xlu1 %v2069_v8  ;;  %2064 = vadd.xlane.f32.xlu0 %v2063_v17 }
 0x5bc   : >> { %v2050_v18 = vpop.xlane.xlu1 %2049 }
 0x5bd   : >> { %3542 = vrcp.f32 %v2050_v18 }
 0x5c3   : >> { %v3543_v19 = vpop.eup %3542 }
 0x5c4   : >> { %v2080_v20 = vmul.f32 %v3543_v19, %v3527_v44 }
 0x5c6   : >> { %v2088_v21 = vpack.c.bf16 %v2080_v20, %v2080_v20 }
 0x5c8   : >> { %3157 = vmatmul.msk.bf16.vlgmr.msrb.gmra.mxu0 %vm1999_vm1, %v2088_v21 }
 0x5c9   : >> { %2298 = vmatpush.bf16.msrb.mxu0 %v3302_v51 }
 0x5e5   : >> { %v2056_v22 = vpop.xlane.xlu2 %2055 }
 0x5e6   : >> { %3544 = vrcp.f32 %v2056_v22 }
 0x5ec   : >> { %v3545_v23 = vpop.eup %3544 }
 0x5ed   : >> { %v2082_v25 = vmul.f32 %v3545_v23, %v3529_v54  ;;  %v2053_v26 = vpop.xlane.xlu2 %2052  ;;  %v2059_v27 = vpop.xlane.xlu0 %2058 }
 0x5ee   : >> { %3546 = vrcp.f32 %v2053_v26 }
 0x5ef   : >> { %v2090_v28 = vpack.c.bf16 %v2082_v25, %v2082_v25  ;;  %3548 = vrcp.f32 %v2059_v27 }
 0x5f1   : >> { %3159 = vmatmul.msk.bf16.vlgmr.msrb.gmra.mxu2 %vm1999_vm1, %v2090_v28 }
 0x5f2   : >> { %2342 = vmatpush.bf16.msrb.mxu2 %v3304_v55 }
 0x5f4   : >> { %v3547_v29 = vpop.eup %3546 }
 0x5f5   : >> { %v3549_v30 = vpop.eup %3548  ;;  %v2081_v31 = vmul.f32 %v3547_v29, %v3531_v60  ;;  %v2068_v34 = vpop.xlane.xlu0 %2067  ;;  %v3307_v60 = vld [vmem:[%s2265_s6 + $0x28] sm:$0xff]  ;;  %s2546_s6 = scalar_lea.vmem %s4645_s8, %s3982_s7 }
 0x5f6   : >> { %v2083_v35 = vmul.f32 %v3549_v30, %v3533_v63  ;;  %v2062_v32 = vpop.xlane.xlu2 %2061  ;;  %3550 = vrcp.f32 %v2068_v34 }
 0x5f7   : >> { %v2089_v33 = vpack.c.bf16 %v2081_v31, %v2081_v31  ;;  %3552 = vrcp.f32 %v2062_v32 }
 0x5f8   : >> { %v2091_v36 = vpack.c.bf16 %v2083_v35, %v2083_v35 }
 0x5f9   : >> { %3158 = vmatmul.msk.bf16.vlgmr.msrb.gmra.mxu1 %vm1999_vm1, %v2089_v33 }
 0x5fa   : >> { %3160 = vmatmul.msk.bf16.vlgmr.msrb.gmra.mxu3 %vm1999_vm1, %v2091_v36  ;;  %2320 = vmatpush.bf16.msrb.mxu1 %v3303_v56 }
 0x5fb   : >> { %2364 = vmatpush.bf16.msrb.mxu3 %v3305_v57  ;;  %v3318_v57 = vld [vmem:[%s2529_s2 + $0x38] sm:$0xff] }
 0x5fc   : >> { %v3551_v37 = vpop.eup %3550 }
 0x5fd   : >> { %v3553_v38 = vpop.eup %3552  ;;  %v2086_v39 = vmul.f32 %v3551_v37, %v3535_v11  ;;  %v2071_v40 = vpop.xlane.xlu1 %2070 }
 0x5fe   : >> { %v2065_v41 = vpop.xlane.xlu0 %2064  ;;  %v2084_v42 = vmul.f32 %v3553_v38, %v3537_v13  ;;  %3554 = vrcp.f32 %v2071_v40 }
 0x5ff   : >> { %v2094_v43 = vpack.c.bf16 %v2086_v39, %v2086_v39  ;;  %3556 = vrcp.f32 %v2065_v41  ;;  %v3519_v41 = vld [vmem:[%s2465_s23] ss:$0 sm:$0xff] }
 0x600   : >> { %v2092_v44 = vpack.c.bf16 %v2084_v42, %v2084_v42 }
 0x601   : >> { %3163 = vmatmul.msk.bf16.vlgmr.msra.gmra.mxu2 %vm1999_vm1, %v2094_v43 }
 0x602   : >> { %3161 = vmatmul.msk.bf16.vlgmr.msra.gmra.mxu0 %vm1999_vm1, %v2092_v44  ;;  %2430 = vmatpush.bf16.msra.mxu2 %v3308_v59  ;;  %v3316_v59 = vld [vmem:[%s2529_s2 + $0x28] sm:$0xff] }
 0x603   : >> { %2386 = vmatpush.bf16.msra.mxu0 %v3306_v58  ;;  %v3317_v58 = vld [vmem:[%s2529_s2 + $0x30] sm:$0xff] }
 0x604   : >> { %v3555_v45 = vpop.eup %3554 }
 0x605   : >> { %v3557_v46 = vpop.eup %3556  ;;  %v2087_v47 = vmul.f32 %v3555_v45, %v3541_v7 }
 0x606   : >> { %v2085_v48 = vmul.f32 %v3557_v46, %v3539_v16 }
 0x607   : >> { %v2095_v49 = vpack.c.bf16 %v2087_v47, %v2087_v47  ;;  %v4001_v47 = vmov 128.0  }
 0x608   : >> { %v2093_v50 = vpack.c.bf16 %v2085_v48, %v2085_v48  ;;  %3558 = vrcp.f32 %v4001_v47 }
 0x60a   : >> { %3162 = vmatmul.msk.bf16.vlgmr.msra.gmra.mxu1 %vm1999_vm1, %v2093_v50  ;;  %3164 = vmatmul.msk.bf16.vlgmr.msra.gmra.mxu3 %vm1999_vm1, %v2095_v49 }
 0x60b   : >> { %2408 = vmatpush.bf16.msra.mxu1 %v3307_v60  ;;  %2452 = vmatpush.bf16.msra.mxu3 %v3309_v61  ;;  %v3315_v60 = vld [vmem:[%s2529_s2 + $0x20] sm:$0xff]  ;;  %v3314_v61 = vld [vmem:[%s2529_s2 + $0x18] sm:$0xff] }
 0x60e   : >> { %v3559_v48 = vpop.eup %3558 }
 0x60f   : >> { %v2479_v49 = vmul.f32 128.0, %v3559_v48  ;;  %vm2483_vm3 = vweird.f32 %v3559_v48 }
 0x611   : >> { %v2480_v50 = vsub.f32 1.0, %v2479_v49 }
 0x613   : >> { %v2481_v51 = vmul.f32 %v3559_v48, %v2480_v50 }
 0x645   : >> { %v2119_v52 = vpop.f32.mrf.mxu0 }
 0x646   : >> { %v2256_v53 = vpack.c.bf16 %v2119_v52, %v2119_v52  ;;  %v2482_v52 = vadd.f32 %v3559_v48, %v2481_v51 }
 0x648   : >> { %3170 = vmatmul.msk.bf16.vlgmr.msrb.gmra.mxu0 %vm1063_vm2, %v2256_v53  ;;  %v4506_v53 = vsel %vm2483_vm3, %v3559_v48, %v2482_v52 }
 0x649   : >> { %2599 = vmatpush.bf16.msrb.mxu0 %v3318_v57 }
 0x64d   : >> { %v2121_v54 = vpop.f32.mrf.mxu0  ;;  %2600 = vmatpush.bf16.msrb.mxu0 %v3317_v58 }
 0x651   : >> { %2601 = vmatpush.bf16.msrb.mxu0 %v3316_v59 }
 0x655   : >> { %2602 = vmatpush.bf16.msrb.mxu0 %v3315_v60 }
 0x659   : >> { %2603 = vmatpush.bf16.msrb.mxu0 %v3314_v61 }
 0x674   : >> { %v2157_v62 = vpop.f32.mrf.mxu2 }
 0x675   : >> { %v2258_v63 = vpack.c.bf16 %v2157_v62, %v2157_v62 }
 0x676   : >> { %v2138_v0 = vpop.f32.mrf.mxu1 }
 0x677   : >> { %v2257_v1 = vpack.c.bf16 %v2138_v0, %v2138_v0  ;;  %3180 = vmatmul.msk.bf16.vlgmr.msrb.gmra.mxu2 %vm1063_vm2, %v2258_v63  ;;  %v3313_v0 = vld [vmem:[%s2529_s2 + $0x10] sm:$0xff] }
 0x678   : >> { %2604 = vmatpush.bf16.msrb.mxu0 %v3313_v0 }
 0x679   : >> { %3175 = vmatmul.msk.bf16.vlgmr.msrb.gmra.mxu1 %vm1063_vm2, %v2257_v1  ;;  %v3312_v1 = vld [vmem:[%s2529_s2 + $0x8] sm:$0xff] }
 0x67c   : >> { %v2159_v3 = vpop.f32.mrf.mxu2  ;;  %2605 = vmatpush.bf16.msrb.mxu0 %v3312_v1 }
 0x67d   : >> { %v2176_v4 = vpop.f32.mrf.mxu3 }
 0x67e   : >> { %v2259_v5 = vpack.c.bf16 %v2176_v4, %v2176_v4  ;;  %v2140_v6 = vpop.f32.mrf.mxu1 }
 0x67f   : >> { %v2195_v9 = vpop.f32.mrf.mxu0 }
 0x680   : >> { %v2260_v10 = vpack.c.bf16 %v2195_v9, %v2195_v9  ;;  %3185 = vmatmul.msk.bf16.vlgmr.msrb.gmra.mxu3 %vm1063_vm2, %v2259_v5  ;;  %v3311_v5 = vld [vmem:[%s2529_s2] sm:$0xff] }
 0x681   : >> { %2606 = vmatpush.bf16.msrb.mxu0 %v3311_v5 }
 0x682   : >> { %3190 = vmatmul.msk.bf16.vlgmr.msra.gmra.mxu0 %vm1063_vm2, %v2260_v10 }
 0x684   : >> { %v2233_v11 = vpop.f32.mrf.mxu2 }
 0x685   : >> { %v2178_v12 = vpop.f32.mrf.mxu3  ;;  %v2262_v13 = vpack.c.bf16 %v2233_v11, %v2233_v11  ;;  %v3327_v11 = vld [vmem:[%s4523_s28 + $0x38] sm:$0xff] }
 0x686   : >> { %2685 = vmatpush.bf16.msrb.mxu1 %v3327_v11 }
 0x687   : >> { %v2197_v14 = vpop.f32.mrf.mxu0  ;;  %v2214_v15 = vpop.f32.mrf.mxu1  ;;  %3200 = vmatmul.msk.bf16.vlgmr.msra.gmra.mxu2 %vm1063_vm2, %v2262_v13  ;;  %v3326_v13 = vld [vmem:[%s4523_s28 + $0x30] sm:$0xff] }
 0x688   : >> { %v2261_v16 = vpack.c.bf16 %v2214_v15, %v2214_v15 }
 0x68a   : >> { %3195 = vmatmul.msk.bf16.vlgmr.msra.gmra.mxu1 %vm1063_vm2, %v2261_v16 }
 0x68b   : >> { %2686 = vmatpush.bf16.msrb.mxu1 %v3326_v13 }
 0x68c   : >> { %v2235_v7 = vpop.f32.mrf.mxu2 }
 0x68d   : >> { %v2252_v8 = vpop.f32.mrf.mxu3 }
 0x68e   : >> { %v2263_v17 = vpack.c.bf16 %v2252_v8, %v2252_v8  ;;  %v3325_v8 = vld [vmem:[%s4523_s28 + $0x28] sm:$0xff] }
 0x68f   : >> { %v2216_v18 = vpop.f32.mrf.mxu1  ;;  %2687 = vmatpush.bf16.msrb.mxu1 %v3325_v8 }
 0x690   : >> { %3205 = vmatmul.msk.bf16.vlgmr.msra.gmra.mxu3 %vm1063_vm2, %v2263_v17  ;;  %v3324_v18 = vld [vmem:[%s4523_s28 + $0x20] sm:$0xff] }
 0x693   : >> { %2688 = vmatpush.bf16.msrb.mxu1 %v3324_v18 }
 0x695   : >> { %v2254_v19 = vpop.f32.mrf.mxu3 }
 0x696   : >> { %v3323_v19 = vld [vmem:[%s4523_s28 + $0x18] sm:$0xff] }
 0x697   : >> { %2689 = vmatpush.bf16.msrb.mxu1 %v3323_v19 }
 0x6c5   : >> { %v2300_v20 = vpop.f32.mrf.mxu0 }
 0x6cd   : >> { %v2302_v21 = vpop.f32.mrf.mxu0 }
 0x6f6   : >> { %v2322_v22 = vpop.f32.mrf.mxu1 }
 0x6f7   : >> { %v2458_v29 = vadd.f32 %v2322_v22, %v2300_v20 }
 0x6fa   : >> { %v2344_v23 = vpop.f32.mrf.mxu2 }
 0x6fb   : >> { %v2459_v30 = vadd.f32 %v2458_v29, %v2344_v23  ;;  %v3322_v23 = vld [vmem:[%s4523_s28 + $0x10] sm:$0xff] }
 0x6fc   : >> { %2690 = vmatpush.bf16.msrb.mxu1 %v3322_v23 }
 0x6fe   : >> { %v2324_v25 = vpop.f32.mrf.mxu1 }
 0x6ff   : >> { %v2388_v26 = vpop.f32.mrf.mxu0 }
 0x702   : >> { %v2346_v27 = vpop.f32.mrf.mxu2 }
 0x703   : >> { %v2366_v28 = vpop.f32.mrf.mxu3 }
 0x704   : >> { %v2460_v35 = vadd.f32 %v2459_v30, %v2366_v28 }
 0x706   : >> { %v2461_v36 = vadd.f32 %v2460_v35, %v2388_v26  ;;  %v3520_v26 = vld [vmem:[%s2472_s30] ss:$0 sm:$0xff] }
 0x707   : >> { %v2390_v31 = vpop.f32.mrf.mxu0  ;;  %v2410_v34 = vpop.f32.mrf.mxu1  ;;  %v3521_v35 = vld [vmem:[%s2474_s12] ss:$0 sm:$0xff]  ;;  %s2699_s12 = scalar_lea.vmem [#allocation18], %s3982_s7  ;;  %s1198_s7 = sadd.s32 1, %s3982_s7  }
 0x708   : >> { %v2462_v38 = vadd.f32 %v2461_v36, %v2410_v34  ;;  %p1195_p7 = scmp.ge.s32.totalorder %s1198_s7, 4  }
 0x70a   : >> { %v2432_v32 = vpop.f32.mrf.mxu2 }
 0x70b   : >> { %v2368_v33 = vpop.f32.mrf.mxu3  ;;  %v2463_v39 = vadd.f32 %v2462_v38, %v2432_v32  ;;  %v3321_v38 = vld [vmem:[%s4523_s28 + $0x8] sm:$0xff] }
 0x70c   : >> { %2691 = vmatpush.bf16.msrb.mxu1 %v3321_v38 }
 0x70f   : >> { %v2412_v37 = vpop.f32.mrf.mxu1 }
 0x712   : >> { %v2434_v40 = vpop.f32.mrf.mxu2 }
 0x713   : >> { %v2454_v42 = vpop.f32.mrf.mxu3  ;;  %v3522_v40 = vld [vmem:[%s2546_s6] ss:$0 sm:$0xff] }
 0x714   : >> { %v2464_v43 = vadd.f32 %v2463_v39, %v2454_v42  ;;  %v3320_v39 = vld [vmem:[%s4523_s28] sm:$0xff] }
 0x715   : >> { %2692 = vmatpush.bf16.msrb.mxu1 %v3320_v39 }
 0x716   : >> { %v2470_v44 = vadd.f32 %v3519_v41, %v2464_v43 }
 0x718   : >> { %v2471_v45 = vadd.f32 %v3978_v24, %v2470_v44 }
 0x71a   : >> { %2476 = vadd.xlane.f32.xlu1 %v2471_v45 }
 0x71b   : >> { %v2456_v46 = vpop.f32.mrf.mxu3 }
 0x71c   : >> { %v3523_v46 = vld [vmem:[%s2632_s9] ss:$0 sm:$0xff] }
 0x78d   : >> { %v2477_v54 = vpop.xlane.xlu1 %2476 }
 0x78e   : >> { %v2485_v55 = vmul.f32 %v4506_v53, %v2477_v54 }
 0x790   : >> { %v4509_v56 = vsub.f32 %v2471_v45, %v2485_v55 }
 0x792   : >> { %v2487_v24 = vmul.f32 %v4509_v56, %v4509_v56  ;;  %v2506_v31 = vmul.f32 %v3520_v26, %v4509_v56 }
 0x794   : >> { %2488 = vadd.xlane.f32.xlu2 %v2487_v24 }
 0x807   : >> { %v2489_v62 = vpop.xlane.xlu2 %2488 }
 0x808   : >> { %v2490_v63 = vmul.f32 0.007874016, %v2489_v62 }
 0x80a   : >> { %3560 = vrsqrt.f32 %v2490_v63  ;;  %vm2498_vm4 = vcmp.eq.f32.partialorder %v2490_v63, inf  ;;  %v2501_v15 = vand.u32 2147483648, %v2490_v63  ;;  %vm2500_vm5 = vcmp.eq.f32.partialorder %v2490_v63, 0.0 }
 0x810   : >> { %v3561_v3 = vpop.eup %3560 }
 0x811   : >> { %v2492_v4 = vmul.f32 %v3561_v3, %v2490_v63 }
 0x813   : >> { %v2493_v6 = vmul.f32 %v3561_v3, %v2492_v4 }
 0x815   : >> { %v2494_v9 = vmul.f32 0.5, %v2493_v6 }
 0x817   : >> { %v2495_v10 = vsub.f32 1.5, %v2494_v9 }
 0x819   : >> { %v2496_v12 = vmul.f32 %v3561_v3, %v2495_v10  ;;  %v3524_v10 = vld [vmem:[%s2699_s12] ss:$0 sm:$0xff] }
 0x81b   : >> { %v2497_v14 = vmul.f32 %v2496_v12, %v2490_v63 }
 0x81d   : >> { %v2499_v16 = vsel %vm2498_vm4, %v2490_v63, %v2497_v14 }
 0x81e   : >> { %v2502_v7 = vsel %vm2500_vm5, %v2501_v15, %v2499_v16  ;;  %v3525_v16 = vld [vmem:[%s2701_s16] ss:$0 sm:$0xff] }
 0x81f   : >> { %v2507_v17 = vadd.f32 1e-06, %v2502_v7 }
 0x821   : >> { %3562 = vrcp.f32 %v2507_v17  ;;  %v2519_v25 = vand.u32 2147483648, %v2507_v17  ;;  %v2517_v28 = vand.u32 2147483647, %v2507_v17  ;;  %vm2513_vm7 = vweird.f32 %v2507_v17 }
 0x823   : >> { %v2520_v30 = vor.u32 1.1754944e-38, %v2519_v25  ;;  %vm2518_vm9 = vcmp.eq.f32.partialorder %v2517_v28, 8.507059e+37 }
 0x827   : >> { %v3563_v20 = vpop.eup %3562 }
 0x828   : >> { %v2509_v21 = vmul.f32 %v3563_v20, %v2507_v17  ;;  %vm2514_vm6 = vweird.f32 %v3563_v20 }
 0x829   : >> { %vm2515_vm8 = vmor %vm2513_vm7, %vm2514_vm6 }
 0x82a   : >> { %v2510_v22 = vsub.f32 1.0, %v2509_v21 }
 0x82c   : >> { %v2511_v27 = vmul.f32 %v3563_v20, %v2510_v22 }
 0x82e   : >> { %v2512_v29 = vadd.f32 %v3563_v20, %v2511_v27 }
 0x830   : >> { %v2516_v34 = vsel %vm2515_vm8, %v3563_v20, %v2512_v29  ;;  %v4002_v20 = vmov (%p1195_p7), 8.0  }
 0x831   : >> { %v2521_v32 = vsel %vm2518_vm9, %v2520_v30, %v2516_v34 }
 0x832   : >> { %v2522_v33 = vmul.f32 %v2521_v32, %v2506_v31 }
 0x834   : >> { %v2526_v36 = vadd.f32 %v3521_v35, %v2522_v33 }
 0x836   : >> { %v2527_v37 = vpack.c.bf16 %v2526_v36, %v2526_v36 }
 0x838   : >> { %2607 = vmatmul.bf16.vlgmr.msrb.gmra.mxu0 %v2527_v37 }
 0x8b5   : >> { %v2608_v41 = vpop.f32.mrf.mxu0 }
 0x8b6   : >> { %v2609_v42 = vadd.f32 %v3522_v40, %v2608_v41 }
 0x8b8   : >> { %v2612_v43 = vmax.f32 %v2609_v42, 0.0 }
 0x8ba   : >> { %v2613_v44 = vpack.c.bf16 %v2612_v43, %v2612_v43 }
 0x8bc   : >> { %2693 = vmatmul.bf16.vlgmr.msrb.gmra.mxu1 %v2613_v44 }
 0x8bd   : >> { %v2610_v45 = vpop.f32.mrf.mxu0 }
 0x939   : >> { %v2694_v47 = vpop.f32.mrf.mxu1 }
 0x93a   : >> { %v2695_v48 = vadd.f32 %v3523_v46, %v2694_v47 }
 0x93c   : >> { %v2698_v49 = vadd.f32 %v2695_v48, %v2526_v36 }
 0x93e   : >> { %2703 = vadd.xlane.f32.xlu0 %v2698_v49 }
 0x941   : >> { %v2696_v50 = vpop.f32.mrf.mxu1 }
 0x9b1   : >> { %v2704_v51 = vpop.xlane.xlu0 %2703 }
 0x9b2   : >> { %v2705_v52 = vmul.f32 %v2704_v51, %v4506_v53 }
 0x9b4   : >> { %v2706_v54 = vsub.f32 %v2698_v49, %v2705_v52 }
 0x9b6   : >> { %v2707_v55 = vmul.f32 %v2706_v54, %v2706_v54  ;;  %v2726_v15 = vmul.f32 %v3524_v10, %v2706_v54 }
 0x9b8   : >> { %2708 = vadd.xlane.f32.xlu1 %v2707_v55 }
 0xa2b   : >> { %v2709_v56 = vpop.xlane.xlu1 %2708 }
 0xa2c   : >> { %v2710_v24 = vmul.f32 0.007874016, %v2709_v56 }
 0xa2e   : >> { %3564 = vrsqrt.f32 %v2710_v24  ;;  %vm2718_vm10 = vcmp.eq.f32.partialorder %v2710_v24, inf  ;;  %v2721_v0 = vand.u32 2147483648, %v2710_v24  ;;  %vm2720_vm11 = vcmp.eq.f32.partialorder %v2710_v24, 0.0 }
 0xa34   : >> { %v3565_v57 = vpop.eup %3564 }
 0xa35   : >> { %v2712_v58 = vmul.f32 %v3565_v57, %v2710_v24 }
 0xa37   : >> { %v2713_v59 = vmul.f32 %v3565_v57, %v2712_v58 }
 0xa39   : >> { %v2714_v60 = vmul.f32 0.5, %v2713_v59 }
 0xa3b   : >> { %v2715_v61 = vsub.f32 1.5, %v2714_v60 }
 0xa3d   : >> { %v2716_v62 = vmul.f32 %v3565_v57, %v2715_v61 }
 0xa3f   : >> { %v2717_v63 = vmul.f32 %v2716_v62, %v2710_v24 }
 0xa41   : >> { %v2719_v1 = vsel %vm2718_vm10, %v2710_v24, %v2717_v63 }
 0xa42   : >> { %v2722_v3 = vsel %vm2720_vm11, %v2721_v0, %v2719_v1 }
 0xa43   : >> { %v2727_v53 = vadd.f32 1e-06, %v2722_v3 }
 0xa45   : >> { %3566 = vrcp.f32 %v2727_v53  ;;  %v2739_v9 = vand.u32 2147483648, %v2727_v53  ;;  %v2737_v12 = vand.u32 2147483647, %v2727_v53  ;;  %vm2733_vm13 = vweird.f32 %v2727_v53 }
 0xa46   : > { %3568 = vrcp.f32 (%p1195_p7), %v4002_v20 }
 0xa47   : >> { %v2740_v14 = vor.u32 1.1754944e-38, %v2739_v9  ;;  %vm2738_vm15 = vcmp.eq.f32.partialorder %v2737_v12, 8.507059e+37 }
 0xa4b   : >> { %v3567_v4 = vpop.eup %3566 }
 0xa4c   : >> { %v2729_v5 = vmul.f32 %v3567_v4, %v2727_v53  ;;  %vm2734_vm12 = vweird.f32 %v3567_v4  ;;  %v3569_v25 = vpop.eup (%p1195_p7), %3568 }
 0xa4d   : >> { %vm2735_vm14 = vmor %vm2733_vm13, %vm2734_vm12  ;;  %v2754_v26 = vmul.f32 (%p1195_p7), 8.0, %v3569_v25  ;;  %vm2758_vm1 = vweird.f32 (%p1195_p7), %v3569_v25 }
 0xa4e   : >> { %v2730_v6 = vsub.f32 1.0, %v2729_v5 }
 0xa4f   : > { %v2755_v28 = vsub.f32 (%p1195_p7), 1.0, %v2754_v26 }
 0xa50   : >> { %v2731_v11 = vmul.f32 %v3567_v4, %v2730_v6 }
 0xa51   : > { %v2756_v29 = vmul.f32 (%p1195_p7), %v3569_v25, %v2755_v28 }
 0xa52   : >> { %v2732_v13 = vadd.f32 %v3567_v4, %v2731_v11 }
 0xa53   : > { %v2757_v31 = vadd.f32 (%p1195_p7), %v3569_v25, %v2756_v29 }
 0xa54   : >> { %v2736_v7 = vsel %vm2735_vm14, %v3567_v4, %v2732_v13 }
 0xa55   : >> { %v2741_v8 = vsel %vm2738_vm15, %v2740_v14, %v2736_v7  ;;  %v2759_v34 = vsel (%p1195_p7), %vm2758_vm1, %v3569_v25, %v2757_v31 }
 0xa56   : >> { %v2742_v17 = vmul.f32 %v2741_v8, %v2726_v15  ;;  %1197 = sbr.rel (!%p1195_p7) target bundleno = 922 (0x39a), region = 241 }
 0xa58   : >> { %v2746_v18 = vadd.f32 %v3525_v16, %v2742_v17  }
 0xa5a   : >> { %v4647_v24 = vmov %v2746_v18  ;;  %v2747_v19 = vrot.slane (%p1195_p7), %v2746_v18, 4 }
 0xa5c   : > { %v2748_v21 = vadd.f32 %v2747_v19, %v2746_v18 }
 0xa5e   : > { %v2749_v22 = vrot.slane %v2748_v21, 2 }
 0xa60   : > { %v2750_v23 = vadd.f32 %v2749_v22, %v2748_v21 }
 0xa62   : > { %v2751_v27 = vrot.slane %v2750_v23, 1 }
 0xa64   : > { %v2752_v30 = vadd.f32 %v2751_v27, %v2750_v23 }
 0xa66   : > { %v2760_v35 = vmul.f32 %v2759_v34, %v2752_v30 }
 0xa68   : > { %v2761_v32 = vsub.f32 %v2746_v18, %v2760_v35  ;;  %2770 = vst [vmem:[%s1020_s3] sm:$0x1] %v2760_v35 }
 0xa6a   : > { %v2762_v2 = vmul.f32 %v2761_v32, %v2761_v32 }
 0xa6c   : > { %v2763_v33 = vrot.slane %v2762_v2, 4 }
 0xa6e   : > { %v2764_v36 = vadd.f32 %v2763_v33, %v2762_v2 }
 0xa70   : > { %v2765_v37 = vrot.slane %v2764_v36, 2 }
 0xa72   : > { %v2766_v38 = vadd.f32 %v2765_v37, %v2764_v36 }
 0xa74   : > { %v2767_v39 = vrot.slane %v2766_v38, 1 }
 0xa76   : > { %v2768_v40 = vadd.f32 %v2767_v39, %v2766_v38 }
 0xa78   : > { %v2769_v41 = vmul.f32 0.14285715, %v2768_v40 }
 0xa7a   : > { %3570 = vrsqrt.f32 %v2769_v41  ;;  %vm2778_vm0 = vcmp.eq.f32.partialorder %v2769_v41, inf  ;;  %v2781_v48 = vand.u32 2147483648, %v2769_v41  ;;  %vm2780_vm2 = vcmp.eq.f32.partialorder %v2769_v41, 0.0 }
 0xa80   : > { %v3571_v42 = vpop.eup %3570 }
 0xa81   : > { %v2772_v43 = vmul.f32 %v3571_v42, %v2769_v41 }
 0xa83   : > { %v2773_v44 = vmul.f32 %v3571_v42, %v2772_v43 }
 0xa85   : > { %v2774_v45 = vmul.f32 0.5, %v2773_v44 }
 0xa87   : > { %v2775_v46 = vsub.f32 1.5, %v2774_v45 }
 0xa89   : > { %v2776_v47 = vmul.f32 %v3571_v42, %v2775_v46 }
 0xa8b   : > { %v2777_v49 = vmul.f32 %v2776_v47, %v2769_v41 }
 0xa8d   : > { %v2779_v50 = vsel %vm2778_vm0, %v2769_v41, %v2777_v49 }
 0xa8e   : > { %v2782_v51 = vsel %vm2780_vm2, %v2781_v48, %v2779_v50 }
 0xa8f   : > { %2783 = vst [vmem:[%s1023_s0] sm:$0x1] %v2782_v51 }
 0xa90 PF: > { %s4648_s23 = sld [smem:[#allocation28_spill]] }
 0xa96   : > { %s45_s7 = sadd.s32 1, %s4648_s23  }
 0xa97   : > { %p42_p8 = scmp.ge.s32.totalorder %s45_s7, 4  }
 0xa99   :  { %44 = sbr.rel (!%p42_p8) target bundleno = 25 (0x19), region = 252 }
 0xa9e   :  { %2813 = vsyncpa [#allocation3], 1 }
 0xa9f   :  { %2815 = vsyncpa [#allocation3 + $0x1], 1 }
 0xaa0   :  { %2816 = vsyncpa [#allocation5], 1 }
 0xaa1   :  { %2817 = vsyncpa [#allocation8], 1 }
 0xaa2   :  { %2818 = vsyncpa [#allocation11], 1 }
 0xaa3   :  { %2819 = vsyncpa [#allocation14], 1 }
 0xaa4   :  { %2820 = vsyncpa [#allocation17], 1 }
 0xaa5   :  { %2821 = vsyncpa [#allocation20], 1 }

</bundles_post_ra>
